<compile_context>
chip_gen: v7x
topology: tpu7x:2x2x1
jax: 0.10.0
libtpu: 0.0.40
codegen_flags: <defaults>
</compile_context>

<pallas_src>
import functools

import numpy as np
import jax
import jax.numpy as jnp
from jax.experimental import pallas as pl
from jax.experimental.pallas import tpu as pltpu


# ----------------------------------------------------------------------------
# Kernel 1: fused conv + 2x2/2 average pool.
#   p_ref : (4, K, N)  four pool-offset patch tensors (rows = flattened kernel
#                      taps, cols = (b, u, v) pooled output positions)
#   w_ref : (Cout, K)  conv weights, tap order matching the patch rows
#   b_ref : (Cout, 1)
#   o_ref : (Cout, N)  pooled conv output (lane-dense: N = B*Hp*Wp >= 128)
# ----------------------------------------------------------------------------
def _conv_pool_kernel(p_ref, w_ref, b_ref, o_ref):
    # avg-pool folded into the conv: average the 4 shifted patch tensors (VPU) ...
    q = 0.25 * (p_ref[0] + p_ref[1] + p_ref[2] + p_ref[3])          # (K, N)
    # ... then a single lane-dense MXU matmul + bias.
    o_ref[...] = (
        jnp.dot(w_ref[...], q, preferred_element_type=jnp.float32) + b_ref[...]
    )


def conv_pool(patches4, w, b):
    """patches4: (4, K, N); w: (Cout, K); b: (Cout, 1) -> (Cout, N)."""
    _, K, N = patches4.shape
    Cout = w.shape[0]
    flops = 2 * Cout * K * N + 4 * K * N + Cout * N
    bytes_acc = 4 * (4 * K * N + Cout * K + Cout + Cout * N)
    return pl.pallas_call(
        _conv_pool_kernel,
        out_shape=jax.ShapeDtypeStruct((Cout, N), jnp.float32),
        grid=(1,),
        in_specs=[
            pl.BlockSpec((4, K, N), lambda i: (0, 0, 0)),
            pl.BlockSpec((Cout, K), lambda i: (0, 0)),
            pl.BlockSpec((Cout, 1), lambda i: (0, 0)),
        ],
        out_specs=pl.BlockSpec((Cout, N), lambda i: (0, 0)),
        compiler_params=pltpu.CompilerParams(dimension_semantics=("arbitrary",)),
        cost_estimate=pl.CostEstimate(
            flops=flops, transcendentals=0, bytes_accessed=bytes_acc),
    )(patches4, w, b)


# ----------------------------------------------------------------------------
# Kernel 2: fused conv2 + avgpool2 + fc1(ReLU) + fc2(ReLU) + fc3.
#   p_ref  : (4, K2, B*S)   pool-offset patches of the pool1 output
#   w2_ref : (C2, K2), b2_ref: (C2, 1)
#   w3_ref : (C2*S, H1), b3_ref: (1, H1)     (rows in PyTorch (c, u, v) order)
#   w4_ref : (H1, H2),  b4_ref: (1, H2)
#   w5_ref : (H2, NC),  b5_ref: (1, NC)
#   o_ref  : (B, NC) logits
# ----------------------------------------------------------------------------
def _conv_pool_fc_kernel(p_ref, w2_ref, b2_ref, w3_ref, b3_ref, w4_ref, b4_ref,
                         w5_ref, b5_ref, o_ref, *, batch, cout, spatial):
    # conv2 + pool2: pool folded into the conv (VPU sum) + one MXU matmul.
    q = 0.25 * (p_ref[0] + p_ref[1] + p_ref[2] + p_ref[3])          # (K2, B*S)
    c2 = (jnp.dot(w2_ref[...], q, preferred_element_type=jnp.float32)
          + b2_ref[...])                                            # (C2, B*S)

    w3 = w3_ref[...]
    w4 = w4_ref[...]
    w5 = w5_ref[...]
    b3 = b3_ref[...]
    b4 = b4_ref[...]
    b5 = b5_ref[...]

    # FC stack, fully VMEM-resident.  The PyTorch flatten order (c, u, v) is
    # realized by accumulating per-channel partial matmuls against the matching
    # row-slices of w3 (avoids any in-kernel reshape/transpose).
    for b in range(batch):
        acc = b3                                                    # (1, H1)
        for c in range(cout):
            act_cb = c2[c:c + 1, b * spatial:(b + 1) * spatial]     # (1, S)
            w3_c = w3[c * spatial:(c + 1) * spatial, :]             # (S, H1)
            acc = acc + jnp.dot(act_cb, w3_c,
                                preferred_element_type=jnp.float32)
        h1 = jnp.maximum(acc, 0.0)                                  # (1, H1)
        h2 = jnp.maximum(
            jnp.dot(h1, w4, preferred_element_type=jnp.float32) + b4, 0.0)
        o_ref[b:b + 1, :] = (
            jnp.dot(h2, w5, preferred_element_type=jnp.float32) + b5)


def conv_pool_fc(patches4, w2, b2, w3, b3, w4, b4, w5, b5, *, batch):
    _, K2, N2 = patches4.shape
    cout = w2.shape[0]
    spatial = N2 // batch
    d_in, h1 = w3.shape
    h2 = w4.shape[1]
    ncls = w5.shape[1]
    flops = (4 * K2 * N2 + 2 * cout * K2 * N2 + cout * N2
             + batch * (2 * d_in * h1 + 2 * h1 * h2 + 2 * h2 * ncls
                        + h1 + h2 + ncls))
    bytes_acc = 4 * (4 * K2 * N2 + cout * K2 + cout
                     + d_in * h1 + h1 + h1 * h2 + h2 + h2 * ncls + ncls
                     + batch * ncls)
    kernel = functools.partial(_conv_pool_fc_kernel,
                               batch=batch, cout=cout, spatial=spatial)
    return pl.pallas_call(
        kernel,
        out_shape=jax.ShapeDtypeStruct((batch, ncls), jnp.float32),
        grid=(1,),
        in_specs=[
            pl.BlockSpec((4, K2, N2), lambda i: (0, 0, 0)),
            pl.BlockSpec(w2.shape, lambda i: (0, 0)),
            pl.BlockSpec(b2.shape, lambda i: (0, 0)),
            pl.BlockSpec(w3.shape, lambda i: (0, 0)),
            pl.BlockSpec(b3.shape, lambda i: (0, 0)),
            pl.BlockSpec(w4.shape, lambda i: (0, 0)),
            pl.BlockSpec(b4.shape, lambda i: (0, 0)),
            pl.BlockSpec(w5.shape, lambda i: (0, 0)),
            pl.BlockSpec(b5.shape, lambda i: (0, 0)),
        ],
        out_specs=pl.BlockSpec((batch, ncls), lambda i: (0, 0)),
        compiler_params=pltpu.CompilerParams(dimension_semantics=("arbitrary",)),
        cost_estimate=pl.CostEstimate(
            flops=flops, transcendentals=0, bytes_accessed=bytes_acc),
    )(patches4, w2, b2, w3, b3, w4, b4, w5, b5)


# ----------------------------------------------------------------------------
# Glue (layout-only): pool-offset patch extraction.
# Returns (4, k*k*C, B*Hp*Wp), patch-row order (i, j, c), column order (b, u, v).
# Averaging the 4 offset tensors and applying the conv weights reproduces
# AvgPool2d(2,2)(Conv2d(x)) exactly (both ops are linear, bias passes through).
# ----------------------------------------------------------------------------
def _pool_offset_patches(x, k):
    B, C, H, W = x.shape
    Hp, Wp = (H - k + 1) // 2, (W - k + 1) // 2
    offs = []
    for dh in (0, 1):
        for dw in (0, 1):
            blocks = []
            for i in range(k):
                for j in range(k):
                    sl = x[:, :, dh + i: dh + i + 2 * Hp: 2,
                           dw + j: dw + j + 2 * Wp: 2]          # (B, C, Hp, Wp)
                    blocks.append(
                        sl.transpose(1, 0, 2, 3).reshape(C, B * Hp * Wp))
            offs.append(jnp.concatenate(blocks, axis=0))        # (k*k*C, B*Hp*Wp)
    return jnp.stack(offs, axis=0)                              # (4, k*k*C, ...)


def _conv_weight_rows(w):
    """(Cout, Cin, k, k) -> (Cout, k*k*Cin) matching the (i, j, c) patch rows."""
    Cout = w.shape[0]
    return w.transpose(0, 2, 3, 1).reshape(Cout, -1)


# ----------------------------------------------------------------------------
# LeNet5 forward (matches the PyTorch module: no ReLU in the conv unit)
# ----------------------------------------------------------------------------
def lenet5_forward(x, p):
    B = x.shape[0]

    # --- fused conv1 + avgpool1 (1 pallas_call) ---
    p1 = _pool_offset_patches(x, 5)                          # (4, 75, B*196)
    a1t = conv_pool(p1, _conv_weight_rows(p["w1"]),
                    p["b1"].reshape(-1, 1))                  # (6, B*196)
    a1 = a1t.reshape(6, B, 14, 14).transpose(1, 0, 2, 3)     # (B, 6, 14, 14)

    # --- fused conv2 + avgpool2 + fc1 + fc2 + fc3 (1 pallas_call) ---
    p2 = _pool_offset_patches(a1, 5)                         # (4, 150, B*25)
    logits = conv_pool_fc(
        p2, _conv_weight_rows(p["w2"]), p["b2"].reshape(-1, 1),
        p["w3"], p["b3"].reshape(1, -1),
        p["w4"], p["b4"].reshape(1, -1),
        p["w5"], p["b5"].reshape(1, -1),
        batch=B)                                             # (B, 10)
    return logits


def init_params(key):
    ks = jax.random.split(key, 10)

    def u(k, shape, fan_in):
        bound = 1.0 / float(np.sqrt(fan_in))
        return jax.random.uniform(k, shape, jnp.float32, -bound, bound)

    return dict(
        w1=u(ks[0], (6, 3, 5, 5), 3 * 25),  b1=u(ks[1], (6,),   3 * 25),
        w2=u(ks[2], (16, 6, 5, 5), 6 * 25), b2=u(ks[3], (16,),  6 * 25),
        w3=u(ks[4], (400, 120), 400),       b3=u(ks[5], (120,), 400),
        w4=u(ks[6], (120, 84), 120),        b4=u(ks[7], (84,),  120),
        w5=u(ks[8], (84, 10), 84),          b5=u(ks[9], (10,),  84),
    )


# ----------------------------------------------------------------------------
# Pure-JAX reference (for correctness check)
# ----------------------------------------------------------------------------
def reference_forward(x, p):
    def conv(x, w, b):
        y = jax.lax.conv_general_dilated(
            x, w, (1, 1), "VALID", dimension_numbers=("NCHW", "OIHW", "NCHW"))
        return y + b[None, :, None, None]

    def pool(x):
        return jax.lax.reduce_window(
            x, 0.0, jax.lax.add, (1, 1, 2, 2), (1, 1, 2, 2), "VALID") * 0.25

    x = pool(conv(x, p["w1"], p["b1"]))
    x = pool(conv(x, p["w2"], p["b2"]))
    x = x.reshape(x.shape[0], -1)
    x = jnp.maximum(x @ p["w3"] + p["b3"], 0.0)
    x = jnp.maximum(x @ p["w4"] + p["b4"], 0.0)
    return x @ p["w5"] + p["b5"]


if __name__ == "__main__":
    key = jax.random.PRNGKey(0)
    kx, kp = jax.random.split(key)
    # CIFAR-10 spatial shape is required by the FC sizing (16*5*5); batch=2.
    x = jax.random.normal(kx, (2, 3, 32, 32), jnp.float32)
    params = init_params(kp)

    fwd = jax.jit(lenet5_forward)
    out = jax.block_until_ready(fwd(x, params))

    assert out.shape == (2, 10), out.shape
    ref = reference_forward(x, params)
    assert bool(jnp.all(jnp.isfinite(out)))
    assert bool(jnp.allclose(out, ref, rtol=2e-2, atol=2e-2)), (out, ref)
    print("KERNEL_OK")
</pallas_src>

<mosaic_0001>
module attributes {stable_mosaic.version = 11 : i64} {
  func.func @_conv_pool_kernel(%arg0: i32, %arg1: memref<4x75x392xf32, #tpu.memory_space<vmem>>, %arg2: memref<6x75xf32, #tpu.memory_space<vmem>>, %arg3: memref<6x1xf32, #tpu.memory_space<vmem>>, %arg4: memref<6x392xf32, #tpu.memory_space<vmem>>) attributes {dimension_semantics = [#tpu.dimension_semantics<arbitrary>], iteration_bounds = array<i64: 1>, scalar_prefetch = 0 : i64, scratch_operands = 0 : i64, tpu.core_type = #tpu.core_type<tc>, window_params = [{pipeline_mode = #tpu.pipeline_mode<synchronous>, transform_indices = @transform_0, window_bounds = array<i64: 4, 75, 392>}, {pipeline_mode = #tpu.pipeline_mode<synchronous>, transform_indices = @transform_1, window_bounds = array<i64: 6, 75>}, {pipeline_mode = #tpu.pipeline_mode<synchronous>, transform_indices = @transform_2, window_bounds = array<i64: 6, 1>}, {pipeline_mode = #tpu.pipeline_mode<synchronous>, transform_indices = @transform_3, window_bounds = array<i64: 6, 392>}]} {
    %c0 = arith.constant 0 : index
    %c0_0 = arith.constant 0 : index
    %c0_1 = arith.constant 0 : index
    %0 = vector.load %arg1[%c0, %c0_0, %c0_1] : memref<4x75x392xf32, #tpu.memory_space<vmem>>, vector<1x75x392xf32>
    %1 = vector.shape_cast %0 : vector<1x75x392xf32> to vector<75x392xf32>
    %c1 = arith.constant 1 : index
    %c0_2 = arith.constant 0 : index
    %c0_3 = arith.constant 0 : index
    %2 = vector.load %arg1[%c1, %c0_2, %c0_3] : memref<4x75x392xf32, #tpu.memory_space<vmem>>, vector<1x75x392xf32>
    %3 = vector.shape_cast %2 : vector<1x75x392xf32> to vector<75x392xf32>
    %4 = arith.addf %1, %3 : vector<75x392xf32>
    %c2 = arith.constant 2 : index
    %c0_4 = arith.constant 0 : index
    %c0_5 = arith.constant 0 : index
    %5 = vector.load %arg1[%c2, %c0_4, %c0_5] : memref<4x75x392xf32, #tpu.memory_space<vmem>>, vector<1x75x392xf32>
    %6 = vector.shape_cast %5 : vector<1x75x392xf32> to vector<75x392xf32>
    %7 = arith.addf %4, %6 : vector<75x392xf32>
    %c3 = arith.constant 3 : index
    %c0_6 = arith.constant 0 : index
    %c0_7 = arith.constant 0 : index
    %8 = vector.load %arg1[%c3, %c0_6, %c0_7] : memref<4x75x392xf32, #tpu.memory_space<vmem>>, vector<1x75x392xf32>
    %9 = vector.shape_cast %8 : vector<1x75x392xf32> to vector<75x392xf32>
    %10 = arith.addf %7, %9 : vector<75x392xf32>
    %cst = arith.constant 2.500000e-01 : f32
    %11 = vector.broadcast %cst : f32 to vector<75x392xf32>
    %12 = arith.mulf %11, %10 : vector<75x392xf32>
    %c0_8 = arith.constant 0 : index
    %c0_9 = arith.constant 0 : index
    %13 = vector.load %arg2[%c0_8, %c0_9] : memref<6x75xf32, #tpu.memory_space<vmem>>, vector<6x75xf32>
    %cst_10 = arith.constant dense<0.000000e+00> : vector<6x392xf32>
    %14 = tpu.matmul %13, %12, %cst_10 {dimension_numbers = #tpu.dot_dimension_numbers<[1], [0], [0], [1], [0, 0, 1, 1], [], []>} : vector<6x75xf32>, vector<75x392xf32>, vector<6x392xf32> -> vector<6x392xf32>
    %c0_11 = arith.constant 0 : index
    %c0_12 = arith.constant 0 : index
    %15 = vector.load %arg3[%c0_11, %c0_12] : memref<6x1xf32, #tpu.memory_space<vmem>>, vector<6x1xf32>
    %16 = vector.broadcast %15 : vector<6x1xf32> to vector<6x392xf32>
    %17 = arith.addf %14, %16 : vector<6x392xf32>
    %c0_13 = arith.constant 0 : index
    %c0_14 = arith.constant 0 : index
    %18 = vector.load %arg4[%c0_13, %c0_14] : memref<6x392xf32, #tpu.memory_space<vmem>>, vector<6x392xf32>
    tpu.vector_store %arg4[%c0_13, %c0_14], %17 {strides = array<i32>} : memref<6x392xf32, #tpu.memory_space<vmem>>, vector<6x392xf32>,
    return
  }
  func.func @transform_0(%arg0: i32) -> (i32, i32, i32) {
    %c0_i32 = arith.constant 0 : i32
    %c0_i32_0 = arith.constant 0 : i32
    %c0_i32_1 = arith.constant 0 : i32
    %c0_i32_2 = arith.constant 0 : i32
    return %c0_i32, %c0_i32_0, %c0_i32_1 : i32, i32, i32
  }
  func.func @transform_1(%arg0: i32) -> (i32, i32) {
    %c0_i32 = arith.constant 0 : i32
    %c0_i32_0 = arith.constant 0 : i32
    %c0_i32_1 = arith.constant 0 : i32
    return %c0_i32, %c0_i32_0 : i32, i32
  }
  func.func @transform_2(%arg0: i32) -> (i32, i32) {
    %c0_i32 = arith.constant 0 : i32
    %c0_i32_0 = arith.constant 0 : i32
    %c0_i32_1 = arith.constant 0 : i32
    return %c0_i32, %c0_i32_0 : i32, i32
  }
  func.func @transform_3(%arg0: i32) -> (i32, i32) {
    %c0_i32 = arith.constant 0 : i32
    %c0_i32_0 = arith.constant 0 : i32
    %c0_i32_1 = arith.constant 0 : i32
    return %c0_i32, %c0_i32_0 : i32, i32
  }
}

module attributes {stable_mosaic.version = 11 : i64} {
  func.func @_conv_pool_fc_kernel(%arg0: i32, %arg1: memref<4x150x50xf32, #tpu.memory_space<vmem>>, %arg2: memref<16x150xf32, #tpu.memory_space<vmem>>, %arg3: memref<16x1xf32, #tpu.memory_space<vmem>>, %arg4: memref<400x120xf32, #tpu.memory_space<vmem>>, %arg5: memref<1x120xf32, #tpu.memory_space<vmem>>, %arg6: memref<120x84xf32, #tpu.memory_space<vmem>>, %arg7: memref<1x84xf32, #tpu.memory_space<vmem>>, %arg8: memref<84x10xf32, #tpu.memory_space<vmem>>, %arg9: memref<1x10xf32, #tpu.memory_space<vmem>>, %arg10: memref<2x10xf32, #tpu.memory_space<vmem>>) attributes {dimension_semantics = [#tpu.dimension_semantics<arbitrary>], iteration_bounds = array<i64: 1>, scalar_prefetch = 0 : i64, scratch_operands = 0 : i64, tpu.core_type = #tpu.core_type<tc>, window_params = [{pipeline_mode = #tpu.pipeline_mode<synchronous>, transform_indices = @transform_0, window_bounds = array<i64: 4, 150, 50>}, {pipeline_mode = #tpu.pipeline_mode<synchronous>, transform_indices = @transform_1, window_bounds = array<i64: 16, 150>}, {pipeline_mode = #tpu.pipeline_mode<synchronous>, transform_indices = @transform_2, window_bounds = array<i64: 16, 1>}, {pipeline_mode = #tpu.pipeline_mode<synchronous>, transform_indices = @transform_3, window_bounds = array<i64: 400, 120>}, {pipeline_mode = #tpu.pipeline_mode<synchronous>, transform_indices = @transform_4, window_bounds = array<i64: 1, 120>}, {pipeline_mode = #tpu.pipeline_mode<synchronous>, transform_indices = @transform_5, window_bounds = array<i64: 120, 84>}, {pipeline_mode = #tpu.pipeline_mode<synchronous>, transform_indices = @transform_6, window_bounds = array<i64: 1, 84>}, {pipeline_mode = #tpu.pipeline_mode<synchronous>, transform_indices = @transform_7, window_bounds = array<i64: 84, 10>}, {pipeline_mode = #tpu.pipeline_mode<synchronous>, transform_indices = @transform_8, window_bounds = array<i64: 1, 10>}, {pipeline_mode = #tpu.pipeline_mode<synchronous>, transform_indices = @transform_9, window_bounds = array<i64: 2, 10>}]} {
    %c0 = arith.constant 0 : index
    %c0_0 = arith.constant 0 : index
    %c0_1 = arith.constant 0 : index
    %0 = vector.load %arg1[%c0, %c0_0, %c0_1] : memref<4x150x50xf32, #tpu.memory_space<vmem>>, vector<1x150x50xf32>
    %1 = vector.shape_cast %0 : vector<1x150x50xf32> to vector<150x50xf32>
    %c1 = arith.constant 1 : index
    %c0_2 = arith.constant 0 : index
    %c0_3 = arith.constant 0 : index
    %2 = vector.load %arg1[%c1, %c0_2, %c0_3] : memref<4x150x50xf32, #tpu.memory_space<vmem>>, vector<1x150x50xf32>
    %3 = vector.shape_cast %2 : vector<1x150x50xf32> to vector<150x50xf32>
    %4 = arith.addf %1, %3 : vector<150x50xf32>
    %c2 = arith.constant 2 : index
    %c0_4 = arith.constant 0 : index
    %c0_5 = arith.constant 0 : index
    %5 = vector.load %arg1[%c2, %c0_4, %c0_5] : memref<4x150x50xf32, #tpu.memory_space<vmem>>, vector<1x150x50xf32>
    %6 = vector.shape_cast %5 : vector<1x150x50xf32> to vector<150x50xf32>
    %7 = arith.addf %4, %6 : vector<150x50xf32>
    %c3 = arith.constant 3 : index
    %c0_6 = arith.constant 0 : index
    %c0_7 = arith.constant 0 : index
    %8 = vector.load %arg1[%c3, %c0_6, %c0_7] : memref<4x150x50xf32, #tpu.memory_space<vmem>>, vector<1x150x50xf32>
    %9 = vector.shape_cast %8 : vector<1x150x50xf32> to vector<150x50xf32>
    %10 = arith.addf %7, %9 : vector<150x50xf32>
    %cst = arith.constant 2.500000e-01 : f32
    %11 = vector.broadcast %cst : f32 to vector<150x50xf32>
    %12 = arith.mulf %11, %10 : vector<150x50xf32>
    %c0_8 = arith.constant 0 : index
    %c0_9 = arith.constant 0 : index
    %13 = vector.load %arg2[%c0_8, %c0_9] : memref<16x150xf32, #tpu.memory_space<vmem>>, vector<16x150xf32>
    %cst_10 = arith.constant dense<0.000000e+00> : vector<16x50xf32>
    %14 = tpu.matmul %13, %12, %cst_10 {dimension_numbers = #tpu.dot_dimension_numbers<[1], [0], [0], [1], [0, 0, 1, 1], [], []>} : vector<16x150xf32>, vector<150x50xf32>, vector<16x50xf32> -> vector<16x50xf32>
    %c0_11 = arith.constant 0 : index
    %c0_12 = arith.constant 0 : index
    %15 = vector.load %arg3[%c0_11, %c0_12] : memref<16x1xf32, #tpu.memory_space<vmem>>, vector<16x1xf32>
    %16 = vector.broadcast %15 : vector<16x1xf32> to vector<16x50xf32>
    %17 = arith.addf %14, %16 : vector<16x50xf32>
    %c0_13 = arith.constant 0 : index
    %c0_14 = arith.constant 0 : index
    %18 = vector.load %arg4[%c0_13, %c0_14] : memref<400x120xf32, #tpu.memory_space<vmem>>, vector<400x120xf32>
    %c0_15 = arith.constant 0 : index
    %c0_16 = arith.constant 0 : index
    %19 = vector.load %arg6[%c0_15, %c0_16] : memref<120x84xf32, #tpu.memory_space<vmem>>, vector<120x84xf32>
    %c0_17 = arith.constant 0 : index
    %c0_18 = arith.constant 0 : index
    %20 = vector.load %arg8[%c0_17, %c0_18] : memref<84x10xf32, #tpu.memory_space<vmem>>, vector<84x10xf32>
    %c0_19 = arith.constant 0 : index
    %c0_20 = arith.constant 0 : index
    %21 = vector.load %arg5[%c0_19, %c0_20] : memref<1x120xf32, #tpu.memory_space<vmem>>, vector<1x120xf32>
    %c0_21 = arith.constant 0 : index
    %c0_22 = arith.constant 0 : index
    %22 = vector.load %arg7[%c0_21, %c0_22] : memref<1x84xf32, #tpu.memory_space<vmem>>, vector<1x84xf32>
    %c0_23 = arith.constant 0 : index
    %c0_24 = arith.constant 0 : index
    %23 = vector.load %arg9[%c0_23, %c0_24] : memref<1x10xf32, #tpu.memory_space<vmem>>, vector<1x10xf32>
    %24 = vector.extract_strided_slice %17 {offsets = [0, 0], sizes = [1, 25], strides = [1, 1]} : vector<16x50xf32> to vector<1x25xf32>
    %25 = vector.extract_strided_slice %18 {offsets = [0, 0], sizes = [25, 120], strides = [1, 1]} : vector<400x120xf32> to vector<25x120xf32>
    %cst_25 = arith.constant dense<0.000000e+00> : vector<1x120xf32>
    %26 = tpu.matmul %24, %25, %cst_25 {dimension_numbers = #tpu.dot_dimension_numbers<[1], [0], [0], [1], [0, 0, 1, 1], [], []>} : vector<1x25xf32>, vector<25x120xf32>, vector<1x120xf32> -> vector<1x120xf32>
    %27 = arith.addf %21, %26 : vector<1x120xf32>
    %28 = vector.extract_strided_slice %17 {offsets = [1, 0], sizes = [1, 25], strides = [1, 1]} : vector<16x50xf32> to vector<1x25xf32>
    %29 = vector.extract_strided_slice %18 {offsets = [25, 0], sizes = [25, 120], strides = [1, 1]} : vector<400x120xf32> to vector<25x120xf32>
    %cst_26 = arith.constant dense<0.000000e+00> : vector<1x120xf32>
    %30 = tpu.matmul %28, %29, %cst_26 {dimension_numbers = #tpu.dot_dimension_numbers<[1], [0], [0], [1], [0, 0, 1, 1], [], []>} : vector<1x25xf32>, vector<25x120xf32>, vector<1x120xf32> -> vector<1x120xf32>
    %31 = arith.addf %27, %30 : vector<1x120xf32>
    %32 = vector.extract_strided_slice %17 {offsets = [2, 0], sizes = [1, 25], strides = [1, 1]} : vector<16x50xf32> to vector<1x25xf32>
    %33 = vector.extract_strided_slice %18 {offsets = [50, 0], sizes = [25, 120], strides = [1, 1]} : vector<400x120xf32> to vector<25x120xf32>
    %cst_27 = arith.constant dense<0.000000e+00> : vector<1x120xf32>
    %34 = tpu.matmul %32, %33, %cst_27 {dimension_numbers = #tpu.dot_dimension_numbers<[1], [0], [0], [1], [0, 0, 1, 1], [], []>} : vector<1x25xf32>, vector<25x120xf32>, vector<1x120xf32> -> vector<1x120xf32>
    %35 = arith.addf %31, %34 : vector<1x120xf32>
    %36 = vector.extract_strided_slice %17 {offsets = [3, 0], sizes = [1, 25], strides = [1, 1]} : vector<16x50xf32> to vector<1x25xf32>
    %37 = vector.extract_strided_slice %18 {offsets = [75, 0], sizes = [25, 120], strides = [1, 1]} : vector<400x120xf32> to vector<25x120xf32>
    %cst_28 = arith.constant dense<0.000000e+00> : vector<1x120xf32>
    %38 = tpu.matmul %36, %37, %cst_28 {dimension_numbers = #tpu.dot_dimension_numbers<[1], [0], [0], [1], [0, 0, 1, 1], [], []>} : vector<1x25xf32>, vector<25x120xf32>, vector<1x120xf32> -> vector<1x120xf32>
    %39 = arith.addf %35, %38 : vector<1x120xf32>
    %40 = vector.extract_strided_slice %17 {offsets = [4, 0], sizes = [1, 25], strides = [1, 1]} : vector<16x50xf32> to vector<1x25xf32>
    %41 = vector.extract_strided_slice %18 {offsets = [100, 0], sizes = [25, 120], strides = [1, 1]} : vector<400x120xf32> to vector<25x120xf32>
    %cst_29 = arith.constant dense<0.000000e+00> : vector<1x120xf32>
    %42 = tpu.matmul %40, %41, %cst_29 {dimension_numbers = #tpu.dot_dimension_numbers<[1], [0], [0], [1], [0, 0, 1, 1], [], []>} : vector<1x25xf32>, vector<25x120xf32>, vector<1x120xf32> -> vector<1x120xf32>
    %43 = arith.addf %39, %42 : vector<1x120xf32>
    %44 = vector.extract_strided_slice %17 {offsets = [5, 0], sizes = [1, 25], strides = [1, 1]} : vector<16x50xf32> to vector<1x25xf32>
    %45 = vector.extract_strided_slice %18 {offsets = [125, 0], sizes = [25, 120], strides = [1, 1]} : vector<400x120xf32> to vector<25x120xf32>
    %cst_30 = arith.constant dense<0.000000e+00> : vector<1x120xf32>
    %46 = tpu.matmul %44, %45, %cst_30 {dimension_numbers = #tpu.dot_dimension_numbers<[1], [0], [0], [1], [0, 0, 1, 1], [], []>} : vector<1x25xf32>, vector<25x120xf32>, vector<1x120xf32> -> vector<1x120xf32>
    %47 = arith.addf %43, %46 : vector<1x120xf32>
    %48 = vector.extract_strided_slice %17 {offsets = [6, 0], sizes = [1, 25], strides = [1, 1]} : vector<16x50xf32> to vector<1x25xf32>
    %49 = vector.extract_strided_slice %18 {offsets = [150, 0], sizes = [25, 120], strides = [1, 1]} : vector<400x120xf32> to vector<25x120xf32>
    %cst_31 = arith.constant dense<0.000000e+00> : vector<1x120xf32>
    %50 = tpu.matmul %48, %49, %cst_31 {dimension_numbers = #tpu.dot_dimension_numbers<[1], [0], [0], [1], [0, 0, 1, 1], [], []>} : vector<1x25xf32>, vector<25x120xf32>, vector<1x120xf32> -> vector<1x120xf32>
    %51 = arith.addf %47, %50 : vector<1x120xf32>
    %52 = vector.extract_strided_slice %17 {offsets = [7, 0], sizes = [1, 25], strides = [1, 1]} : vector<16x50xf32> to vector<1x25xf32>
    %53 = vector.extract_strided_slice %18 {offsets = [175, 0], sizes = [25, 120], strides = [1, 1]} : vector<400x120xf32> to vector<25x120xf32>
    %cst_32 = arith.constant dense<0.000000e+00> : vector<1x120xf32>
    %54 = tpu.matmul %52, %53, %cst_32 {dimension_numbers = #tpu.dot_dimension_numbers<[1], [0], [0], [1], [0, 0, 1, 1], [], []>} : vector<1x25xf32>, vector<25x120xf32>, vector<1x120xf32> -> vector<1x120xf32>
    %55 = arith.addf %51, %54 : vector<1x120xf32>
    %56 = vector.extract_strided_slice %17 {offsets = [8, 0], sizes = [1, 25], strides = [1, 1]} : vector<16x50xf32> to vector<1x25xf32>
    %57 = vector.extract_strided_slice %18 {offsets = [200, 0], sizes = [25, 120], strides = [1, 1]} : vector<400x120xf32> to vector<25x120xf32>
    %cst_33 = arith.constant dense<0.000000e+00> : vector<1x120xf32>
    %58 = tpu.matmul %56, %57, %cst_33 {dimension_numbers = #tpu.dot_dimension_numbers<[1], [0], [0], [1], [0, 0, 1, 1], [], []>} : vector<1x25xf32>, vector<25x120xf32>, vector<1x120xf32> -> vector<1x120xf32>
    %59 = arith.addf %55, %58 : vector<1x120xf32>
    %60 = vector.extract_strided_slice %17 {offsets = [9, 0], sizes = [1, 25], strides = [1, 1]} : vector<16x50xf32> to vector<1x25xf32>
    %61 = vector.extract_strided_slice %18 {offsets = [225, 0], sizes = [25, 120], strides = [1, 1]} : vector<400x120xf32> to vector<25x120xf32>
    %cst_34 = arith.constant dense<0.000000e+00> : vector<1x120xf32>
    %62 = tpu.matmul %60, %61, %cst_34 {dimension_numbers = #tpu.dot_dimension_numbers<[1], [0], [0], [1], [0, 0, 1, 1], [], []>} : vector<1x25xf32>, vector<25x120xf32>, vector<1x120xf32> -> vector<1x120xf32>
    %63 = arith.addf %59, %62 : vector<1x120xf32>
    %64 = vector.extract_strided_slice %17 {offsets = [10, 0], sizes = [1, 25], strides = [1, 1]} : vector<16x50xf32> to vector<1x25xf32>
    %65 = vector.extract_strided_slice %18 {offsets = [250, 0], sizes = [25, 120], strides = [1, 1]} : vector<400x120xf32> to vector<25x120xf32>
    %cst_35 = arith.constant dense<0.000000e+00> : vector<1x120xf32>
    %66 = tpu.matmul %64, %65, %cst_35 {dimension_numbers = #tpu.dot_dimension_numbers<[1], [0], [0], [1], [0, 0, 1, 1], [], []>} : vector<1x25xf32>, vector<25x120xf32>, vector<1x120xf32> -> vector<1x120xf32>
    %67 = arith.addf %63, %66 : vector<1x120xf32>
    %68 = vector.extract_strided_slice %17 {offsets = [11, 0], sizes = [1, 25], strides = [1, 1]} : vector<16x50xf32> to vector<1x25xf32>
    %69 = vector.extract_strided_slice %18 {offsets = [275, 0], sizes = [25, 120], strides = [1, 1]} : vector<400x120xf32> to vector<25x120xf32>
    %cst_36 = arith.constant dense<0.000000e+00> : vector<1x120xf32>
    %70 = tpu.matmul %68, %69, %cst_36 {dimension_numbers = #tpu.dot_dimension_numbers<[1], [0], [0], [1], [0, 0, 1, 1], [], []>} : vector<1x25xf32>, vector<25x120xf32>, vector<1x120xf32> -> vector<1x120xf32>
    %71 = arith.addf %67, %70 : vector<1x120xf32>
    %72 = vector.extract_strided_slice %17 {offsets = [12, 0], sizes = [1, 25], strides = [1, 1]} : vector<16x50xf32> to vector<1x25xf32>
    %73 = vector.extract_strided_slice %18 {offsets = [300, 0], sizes = [25, 120], strides = [1, 1]} : vector<400x120xf32> to vector<25x120xf32>
    %cst_37 = arith.constant dense<0.000000e+00> : vector<1x120xf32>
    %74 = tpu.matmul %72, %73, %cst_37 {dimension_numbers = #tpu.dot_dimension_numbers<[1], [0], [0], [1], [0, 0, 1, 1], [], []>} : vector<1x25xf32>, vector<25x120xf32>, vector<1x120xf32> -> vector<1x120xf32>
    %75 = arith.addf %71, %74 : vector<1x120xf32>
    %76 = vector.extract_strided_slice %17 {offsets = [13, 0], sizes = [1, 25], strides = [1, 1]} : vector<16x50xf32> to vector<1x25xf32>
    %77 = vector.extract_strided_slice %18 {offsets = [325, 0], sizes = [25, 120], strides = [1, 1]} : vector<400x120xf32> to vector<25x120xf32>
    %cst_38 = arith.constant dense<0.000000e+00> : vector<1x120xf32>
    %78 = tpu.matmul %76, %77, %cst_38 {dimension_numbers = #tpu.dot_dimension_numbers<[1], [0], [0], [1], [0, 0, 1, 1], [], []>} : vector<1x25xf32>, vector<25x120xf32>, vector<1x120xf32> -> vector<1x120xf32>
    %79 = arith.addf %75, %78 : vector<1x120xf32>
    %80 = vector.extract_strided_slice %17 {offsets = [14, 0], sizes = [1, 25], strides = [1, 1]} : vector<16x50xf32> to vector<1x25xf32>
    %81 = vector.extract_strided_slice %18 {offsets = [350, 0], sizes = [25, 120], strides = [1, 1]} : vector<400x120xf32> to vector<25x120xf32>
    %cst_39 = arith.constant dense<0.000000e+00> : vector<1x120xf32>
    %82 = tpu.matmul %80, %81, %cst_39 {dimension_numbers = #tpu.dot_dimension_numbers<[1], [0], [0], [1], [0, 0, 1, 1], [], []>} : vector<1x25xf32>, vector<25x120xf32>, vector<1x120xf32> -> vector<1x120xf32>
    %83 = arith.addf %79, %82 : vector<1x120xf32>
    %84 = vector.extract_strided_slice %17 {offsets = [15, 0], sizes = [1, 25], strides = [1, 1]} : vector<16x50xf32> to vector<1x25xf32>
    %85 = vector.extract_strided_slice %18 {offsets = [375, 0], sizes = [25, 120], strides = [1, 1]} : vector<400x120xf32> to vector<25x120xf32>
    %cst_40 = arith.constant dense<0.000000e+00> : vector<1x120xf32>
    %86 = tpu.matmul %84, %85, %cst_40 {dimension_numbers = #tpu.dot_dimension_numbers<[1], [0], [0], [1], [0, 0, 1, 1], [], []>} : vector<1x25xf32>, vector<25x120xf32>, vector<1x120xf32> -> vector<1x120xf32>
    %87 = arith.addf %83, %86 : vector<1x120xf32>
    %cst_41 = arith.constant 0.000000e+00 : f32
    %88 = vector.broadcast %cst_41 : f32 to vector<1x120xf32>
    %89 = arith.maximumf %87, %88 : vector<1x120xf32>
    %cst_42 = arith.constant dense<0.000000e+00> : vector<1x84xf32>
    %90 = tpu.matmul %89, %19, %cst_42 {dimension_numbers = #tpu.dot_dimension_numbers<[1], [0], [0], [1], [0, 0, 1, 1], [], []>} : vector<1x120xf32>, vector<120x84xf32>, vector<1x84xf32> -> vector<1x84xf32>
    %91 = arith.addf %90, %22 : vector<1x84xf32>
    %cst_43 = arith.constant 0.000000e+00 : f32
    %92 = vector.broadcast %cst_43 : f32 to vector<1x84xf32>
    %93 = arith.maximumf %91, %92 : vector<1x84xf32>
    %cst_44 = arith.constant dense<0.000000e+00> : vector<1x10xf32>
    %94 = tpu.matmul %93, %20, %cst_44 {dimension_numbers = #tpu.dot_dimension_numbers<[1], [0], [0], [1], [0, 0, 1, 1], [], []>} : vector<1x84xf32>, vector<84x10xf32>, vector<1x10xf32> -> vector<1x10xf32>
    %95 = arith.addf %94, %23 : vector<1x10xf32>
    %c0_45 = arith.constant 0 : index
    %c0_46 = arith.constant 0 : index
    %96 = vector.load %arg10[%c0_45, %c0_46] : memref<2x10xf32, #tpu.memory_space<vmem>>, vector<1x10xf32>
    tpu.vector_store %arg10[%c0_45, %c0_46], %95 {strides = array<i32>} : memref<2x10xf32, #tpu.memory_space<vmem>>, vector<1x10xf32>,
    %97 = vector.extract_strided_slice %17 {offsets = [0, 25], sizes = [1, 25], strides = [1, 1]} : vector<16x50xf32> to vector<1x25xf32>
    %98 = vector.extract_strided_slice %18 {offsets = [0, 0], sizes = [25, 120], strides = [1, 1]} : vector<400x120xf32> to vector<25x120xf32>
    %cst_47 = arith.constant dense<0.000000e+00> : vector<1x120xf32>
    %99 = tpu.matmul %97, %98, %cst_47 {dimension_numbers = #tpu.dot_dimension_numbers<[1], [0], [0], [1], [0, 0, 1, 1], [], []>} : vector<1x25xf32>, vector<25x120xf32>, vector<1x120xf32> -> vector<1x120xf32>
    %100 = arith.addf %21, %99 : vector<1x120xf32>
    %101 = vector.extract_strided_slice %17 {offsets = [1, 25], sizes = [1, 25], strides = [1, 1]} : vector<16x50xf32> to vector<1x25xf32>
    %102 = vector.extract_strided_slice %18 {offsets = [25, 0], sizes = [25, 120], strides = [1, 1]} : vector<400x120xf32> to vector<25x120xf32>
    %cst_48 = arith.constant dense<0.000000e+00> : vector<1x120xf32>
    %103 = tpu.matmul %101, %102, %cst_48 {dimension_numbers = #tpu.dot_dimension_numbers<[1], [0], [0], [1], [0, 0, 1, 1], [], []>} : vector<1x25xf32>, vector<25x120xf32>, vector<1x120xf32> -> vector<1x120xf32>
    %104 = arith.addf %100, %103 : vector<1x120xf32>
    %105 = vector.extract_strided_slice %17 {offsets = [2, 25], sizes = [1, 25], strides = [1, 1]} : vector<16x50xf32> to vector<1x25xf32>
    %106 = vector.extract_strided_slice %18 {offsets = [50, 0], sizes = [25, 120], strides = [1, 1]} : vector<400x120xf32> to vector<25x120xf32>
    %cst_49 = arith.constant dense<0.000000e+00> : vector<1x120xf32>
    %107 = tpu.matmul %105, %106, %cst_49 {dimension_numbers = #tpu.dot_dimension_numbers<[1], [0], [0], [1], [0, 0, 1, 1], [], []>} : vector<1x25xf32>, vector<25x120xf32>, vector<1x120xf32> -> vector<1x120xf32>
    %108 = arith.addf %104, %107 : vector<1x120xf32>
    %109 = vector.extract_strided_slice %17 {offsets = [3, 25], sizes = [1, 25], strides = [1, 1]} : vector<16x50xf32> to vector<1x25xf32>
    %110 = vector.extract_strided_slice %18 {offsets = [75, 0], sizes = [25, 120], strides = [1, 1]} : vector<400x120xf32> to vector<25x120xf32>
    %cst_50 = arith.constant dense<0.000000e+00> : vector<1x120xf32>
    %111 = tpu.matmul %109, %110, %cst_50 {dimension_numbers = #tpu.dot_dimension_numbers<[1], [0], [0], [1], [0, 0, 1, 1], [], []>} : vector<1x25xf32>, vector<25x120xf32>, vector<1x120xf32> -> vector<1x120xf32>
    %112 = arith.addf %108, %111 : vector<1x120xf32>
    %113 = vector.extract_strided_slice %17 {offsets = [4, 25], sizes = [1, 25], strides = [1, 1]} : vector<16x50xf32> to vector<1x25xf32>
    %114 = vector.extract_strided_slice %18 {offsets = [100, 0], sizes = [25, 120], strides = [1, 1]} : vector<400x120xf32> to vector<25x120xf32>
    %cst_51 = arith.constant dense<0.000000e+00> : vector<1x120xf32>
    %115 = tpu.matmul %113, %114, %cst_51 {dimension_numbers = #tpu.dot_dimension_numbers<[1], [0], [0], [1], [0, 0, 1, 1], [], []>} : vector<1x25xf32>, vector<25x120xf32>, vector<1x120xf32> -> vector<1x120xf32>
    %116 = arith.addf %112, %115 : vector<1x120xf32>
    %117 = vector.extract_strided_slice %17 {offsets = [5, 25], sizes = [1, 25], strides = [1, 1]} : vector<16x50xf32> to vector<1x25xf32>
    %118 = vector.extract_strided_slice %18 {offsets = [125, 0], sizes = [25, 120], strides = [1, 1]} : vector<400x120xf32> to vector<25x120xf32>
    %cst_52 = arith.constant dense<0.000000e+00> : vector<1x120xf32>
    %119 = tpu.matmul %117, %118, %cst_52 {dimension_numbers = #tpu.dot_dimension_numbers<[1], [0], [0], [1], [0, 0, 1, 1], [], []>} : vector<1x25xf32>, vector<25x120xf32>, vector<1x120xf32> -> vector<1x120xf32>
    %120 = arith.addf %116, %119 : vector<1x120xf32>
    %121 = vector.extract_strided_slice %17 {offsets = [6, 25], sizes = [1, 25], strides = [1, 1]} : vector<16x50xf32> to vector<1x25xf32>
    %122 = vector.extract_strided_slice %18 {offsets = [150, 0], sizes = [25, 120], strides = [1, 1]} : vector<400x120xf32> to vector<25x120xf32>
    %cst_53 = arith.constant dense<0.000000e+00> : vector<1x120xf32>
    %123 = tpu.matmul %121, %122, %cst_53 {dimension_numbers = #tpu.dot_dimension_numbers<[1], [0], [0], [1], [0, 0, 1, 1], [], []>} : vector<1x25xf32>, vector<25x120xf32>, vector<1x120xf32> -> vector<1x120xf32>
    %124 = arith.addf %120, %123 : vector<1x120xf32>
    %125 = vector.extract_strided_slice %17 {offsets = [7, 25], sizes = [1, 25], strides = [1, 1]} : vector<16x50xf32> to vector<1x25xf32>
    %126 = vector.extract_strided_slice %18 {offsets = [175, 0], sizes = [25, 120], strides = [1, 1]} : vector<400x120xf32> to vector<25x120xf32>
    %cst_54 = arith.constant dense<0.000000e+00> : vector<1x120xf32>
    %127 = tpu.matmul %125, %126, %cst_54 {dimension_numbers = #tpu.dot_dimension_numbers<[1], [0], [0], [1], [0, 0, 1, 1], [], []>} : vector<1x25xf32>, vector<25x120xf32>, vector<1x120xf32> -> vector<1x120xf32>
    %128 = arith.addf %124, %127 : vector<1x120xf32>
    %129 = vector.extract_strided_slice %17 {offsets = [8, 25], sizes = [1, 25], strides = [1, 1]} : vector<16x50xf32> to vector<1x25xf32>
    %130 = vector.extract_strided_slice %18 {offsets = [200, 0], sizes = [25, 120], strides = [1, 1]} : vector<400x120xf32> to vector<25x120xf32>
    %cst_55 = arith.constant dense<0.000000e+00> : vector<1x120xf32>
    %131 = tpu.matmul %129, %130, %cst_55 {dimension_numbers = #tpu.dot_dimension_numbers<[1], [0], [0], [1], [0, 0, 1, 1], [], []>} : vector<1x25xf32>, vector<25x120xf32>, vector<1x120xf32> -> vector<1x120xf32>
    %132 = arith.addf %128, %131 : vector<1x120xf32>
    %133 = vector.extract_strided_slice %17 {offsets = [9, 25], sizes = [1, 25], strides = [1, 1]} : vector<16x50xf32> to vector<1x25xf32>
    %134 = vector.extract_strided_slice %18 {offsets = [225, 0], sizes = [25, 120], strides = [1, 1]} : vector<400x120xf32> to vector<25x120xf32>
    %cst_56 = arith.constant dense<0.000000e+00> : vector<1x120xf32>
    %135 = tpu.matmul %133, %134, %cst_56 {dimension_numbers = #tpu.dot_dimension_numbers<[1], [0], [0], [1], [0, 0, 1, 1], [], []>} : vector<1x25xf32>, vector<25x120xf32>, vector<1x120xf32> -> vector<1x120xf32>
    %136 = arith.addf %132, %135 : vector<1x120xf32>
    %137 = vector.extract_strided_slice %17 {offsets = [10, 25], sizes = [1, 25], strides = [1, 1]} : vector<16x50xf32> to vector<1x25xf32>
    %138 = vector.extract_strided_slice %18 {offsets = [250, 0], sizes = [25, 120], strides = [1, 1]} : vector<400x120xf32> to vector<25x120xf32>
    %cst_57 = arith.constant dense<0.000000e+00> : vector<1x120xf32>
    %139 = tpu.matmul %137, %138, %cst_57 {dimension_numbers = #tpu.dot_dimension_numbers<[1], [0], [0], [1], [0, 0, 1, 1], [], []>} : vector<1x25xf32>, vector<25x120xf32>, vector<1x120xf32> -> vector<1x120xf32>
    %140 = arith.addf %136, %139 : vector<1x120xf32>
    %141 = vector.extract_strided_slice %17 {offsets = [11, 25], sizes = [1, 25], strides = [1, 1]} : vector<16x50xf32> to vector<1x25xf32>
    %142 = vector.extract_strided_slice %18 {offsets = [275, 0], sizes = [25, 120], strides = [1, 1]} : vector<400x120xf32> to vector<25x120xf32>
    %cst_58 = arith.constant dense<0.000000e+00> : vector<1x120xf32>
    %143 = tpu.matmul %141, %142, %cst_58 {dimension_numbers = #tpu.dot_dimension_numbers<[1], [0], [0], [1], [0, 0, 1, 1], [], []>} : vector<1x25xf32>, vector<25x120xf32>, vector<1x120xf32> -> vector<1x120xf32>
    %144 = arith.addf %140, %143 : vector<1x120xf32>
    %145 = vector.extract_strided_slice %17 {offsets = [12, 25], sizes = [1, 25], strides = [1, 1]} : vector<16x50xf32> to vector<1x25xf32>
    %146 = vector.extract_strided_slice %18 {offsets = [300, 0], sizes = [25, 120], strides = [1, 1]} : vector<400x120xf32> to vector<25x120xf32>
    %cst_59 = arith.constant dense<0.000000e+00> : vector<1x120xf32>
    %147 = tpu.matmul %145, %146, %cst_59 {dimension_numbers = #tpu.dot_dimension_numbers<[1], [0], [0], [1], [0, 0, 1, 1], [], []>} : vector<1x25xf32>, vector<25x120xf32>, vector<1x120xf32> -> vector<1x120xf32>
    %148 = arith.addf %144, %147 : vector<1x120xf32>
    %149 = vector.extract_strided_slice %17 {offsets = [13, 25], sizes = [1, 25], strides = [1, 1]} : vector<16x50xf32> to vector<1x25xf32>
    %150 = vector.extract_strided_slice %18 {offsets = [325, 0], sizes = [25, 120], strides = [1, 1]} : vector<400x120xf32> to vector<25x120xf32>
    %cst_60 = arith.constant dense<0.000000e+00> : vector<1x120xf32>
    %151 = tpu.matmul %149, %150, %cst_60 {dimension_numbers = #tpu.dot_dimension_numbers<[1], [0], [0], [1], [0, 0, 1, 1], [], []>} : vector<1x25xf32>, vector<25x120xf32>, vector<1x120xf32> -> vector<1x120xf32>
    %152 = arith.addf %148, %151 : vector<1x120xf32>
    %153 = vector.extract_strided_slice %17 {offsets = [14, 25], sizes = [1, 25], strides = [1, 1]} : vector<16x50xf32> to vector<1x25xf32>
    %154 = vector.extract_strided_slice %18 {offsets = [350, 0], sizes = [25, 120], strides = [1, 1]} : vector<400x120xf32> to vector<25x120xf32>
    %cst_61 = arith.constant dense<0.000000e+00> : vector<1x120xf32>
    %155 = tpu.matmul %153, %154, %cst_61 {dimension_numbers = #tpu.dot_dimension_numbers<[1], [0], [0], [1], [0, 0, 1, 1], [], []>} : vector<1x25xf32>, vector<25x120xf32>, vector<1x120xf32> -> vector<1x120xf32>
    %156 = arith.addf %152, %155 : vector<1x120xf32>
    %157 = vector.extract_strided_slice %17 {offsets = [15, 25], sizes = [1, 25], strides = [1, 1]} : vector<16x50xf32> to vector<1x25xf32>
    %158 = vector.extract_strided_slice %18 {offsets = [375, 0], sizes = [25, 120], strides = [1, 1]} : vector<400x120xf32> to vector<25x120xf32>
    %cst_62 = arith.constant dense<0.000000e+00> : vector<1x120xf32>
    %159 = tpu.matmul %157, %158, %cst_62 {dimension_numbers = #tpu.dot_dimension_numbers<[1], [0], [0], [1], [0, 0, 1, 1], [], []>} : vector<1x25xf32>, vector<25x120xf32>, vector<1x120xf32> -> vector<1x120xf32>
    %160 = arith.addf %156, %159 : vector<1x120xf32>
    %cst_63 = arith.constant 0.000000e+00 : f32
    %161 = vector.broadcast %cst_63 : f32 to vector<1x120xf32>
    %162 = arith.maximumf %160, %161 : vector<1x120xf32>
    %cst_64 = arith.constant dense<0.000000e+00> : vector<1x84xf32>
    %163 = tpu.matmul %162, %19, %cst_64 {dimension_numbers = #tpu.dot_dimension_numbers<[1], [0], [0], [1], [0, 0, 1, 1], [], []>} : vector<1x120xf32>, vector<120x84xf32>, vector<1x84xf32> -> vector<1x84xf32>
    %164 = arith.addf %163, %22 : vector<1x84xf32>
    %cst_65 = arith.constant 0.000000e+00 : f32
    %165 = vector.broadcast %cst_65 : f32 to vector<1x84xf32>
    %166 = arith.maximumf %164, %165 : vector<1x84xf32>
    %cst_66 = arith.constant dense<0.000000e+00> : vector<1x10xf32>
    %167 = tpu.matmul %166, %20, %cst_66 {dimension_numbers = #tpu.dot_dimension_numbers<[1], [0], [0], [1], [0, 0, 1, 1], [], []>} : vector<1x84xf32>, vector<84x10xf32>, vector<1x10xf32> -> vector<1x10xf32>
    %168 = arith.addf %167, %23 : vector<1x10xf32>
    %c1_67 = arith.constant 1 : index
    %c0_68 = arith.constant 0 : index
    %169 = vector.load %arg10[%c1_67, %c0_68] : memref<2x10xf32, #tpu.memory_space<vmem>>, vector<1x10xf32>
    tpu.vector_store %arg10[%c1_67, %c0_68], %168 {strides = array<i32>} : memref<2x10xf32, #tpu.memory_space<vmem>>, vector<1x10xf32>,
    return
  }
  func.func @transform_0(%arg0: i32) -> (i32, i32, i32) {
    %c0_i32 = arith.constant 0 : i32
    %c0_i32_0 = arith.constant 0 : i32
    %c0_i32_1 = arith.constant 0 : i32
    %c0_i32_2 = arith.constant 0 : i32
    return %c0_i32, %c0_i32_0, %c0_i32_1 : i32, i32, i32
  }
  func.func @transform_1(%arg0: i32) -> (i32, i32) {
    %c0_i32 = arith.constant 0 : i32
    %c0_i32_0 = arith.constant 0 : i32
    %c0_i32_1 = arith.constant 0 : i32
    return %c0_i32, %c0_i32_0 : i32, i32
  }
  func.func @transform_2(%arg0: i32) -> (i32, i32) {
    %c0_i32 = arith.constant 0 : i32
    %c0_i32_0 = arith.constant 0 : i32
    %c0_i32_1 = arith.constant 0 : i32
    return %c0_i32, %c0_i32_0 : i32, i32
  }
  func.func @transform_3(%arg0: i32) -> (i32, i32) {
    %c0_i32 = arith.constant 0 : i32
    %c0_i32_0 = arith.constant 0 : i32
    %c0_i32_1 = arith.constant 0 : i32
    return %c0_i32, %c0_i32_0 : i32, i32
  }
  func.func @transform_4(%arg0: i32) -> (i32, i32) {
    %c0_i32 = arith.constant 0 : i32
    %c0_i32_0 = arith.constant 0 : i32
    %c0_i32_1 = arith.constant 0 : i32
    return %c0_i32, %c0_i32_0 : i32, i32
  }
  func.func @transform_5(%arg0: i32) -> (i32, i32) {
    %c0_i32 = arith.constant 0 : i32
    %c0_i32_0 = arith.constant 0 : i32
    %c0_i32_1 = arith.constant 0 : i32
    return %c0_i32, %c0_i32_0 : i32, i32
  }
  func.func @transform_6(%arg0: i32) -> (i32, i32) {
    %c0_i32 = arith.constant 0 : i32
    %c0_i32_0 = arith.constant 0 : i32
    %c0_i32_1 = arith.constant 0 : i32
    return %c0_i32, %c0_i32_0 : i32, i32
  }
  func.func @transform_7(%arg0: i32) -> (i32, i32) {
    %c0_i32 = arith.constant 0 : i32
    %c0_i32_0 = arith.constant 0 : i32
    %c0_i32_1 = arith.constant 0 : i32
    return %c0_i32, %c0_i32_0 : i32, i32
  }
  func.func @transform_8(%arg0: i32) -> (i32, i32) {
    %c0_i32 = arith.constant 0 : i32
    %c0_i32_0 = arith.constant 0 : i32
    %c0_i32_1 = arith.constant 0 : i32
    return %c0_i32, %c0_i32_0 : i32, i32
  }
  func.func @transform_9(%arg0: i32) -> (i32, i32) {
    %c0_i32 = arith.constant 0 : i32
    %c0_i32_0 = arith.constant 0 : i32
    %c0_i32_1 = arith.constant 0 : i32
    return %c0_i32, %c0_i32_0 : i32, i32
  }
}

</mosaic_0001>

<bundles_post_ra>
// kernel: lenet5_forward.2
= control target key start
LH: loop header
LB: loop body
LE: loop exit
PB: predicated region body
PF: predicated region fallthrough
CT: control target
= control target key end

     0   :  { %v686_v3 = vmov 0.0   ;;  %v687_v8 = vmov 0   ;;  %vm348_vm0 = vcmask 1042432   ;;  %vm688_vm1 = vmmov 1   ;;  %s1220_s0 = inlined_call_operand.vmem [shape: f32[4,75,392], index: 0, kind: input, shape index: {}]   ;;  %s1221_s2 = inlined_call_operand.vmem [shape: f32[6,1], index: 2, kind: input, shape index: {}]   ;;  %s1222_s1 = inlined_call_operand.vmem [shape: f32[6,75], index: 1, kind: input, shape index: {}]   ;;  %s1223_s3 = inlined_call_operand.vmem [shape: f32[6,392], index: 3, kind: output, shape index: {}]  }
   0x1   :  { %v15_v0 = vld [vmem:[%s1220_s0 + $0x8] sm:$0xff]  ;;  %425 = vmatprep.mubr.f32.mxu0 %v686_v3  ;;  %496 = vmatprep.mubr.f32.mxu1 %v686_v3  ;;  %v17_v12 = vld [vmem:[%s1220_s0 + $0x18] sm:$0xff]  ;;  %v14_v25 = vld [vmem:[%s1220_s0] sm:$0xff]  ;;  %vm344_vm3 = vcmask 613376   ;;  %vm506_vm4 = vcmask 62464  }
   0x2   :  { %v19_v1 = vld [vmem:[%s1220_s0 + $0x28] sm:$0xff]  ;;  %685 = vset.pattern.permute.xlu0 %v687_v8  ;;  %v21_v14 = vld [vmem:[%s1220_s0 + $0x38] sm:$0xff]  ;;  %v18_v26 = vld [vmem:[%s1220_s0 + $0x20] sm:$0xff] }
   0x3   :  { %v513_v2 = vld [vmem:[%s1220_s0 + $0x148] sm:$0xff]  ;;  %v515_v15 = vld [vmem:[%s1220_s0 + $0x158] sm:$0xff]  ;;  %v512_v30 = vld [vmem:[%s1220_s0 + $0x140] sm:$0xff] }
   0x4   :  { %v517_v4 = vld [vmem:[%s1220_s0 + $0x168] sm:$0xff]  ;;  %v96_v5 = vadd.f32 %v513_v2, %v15_v0  ;;  %v519_v16 = vld [vmem:[%s1220_s0 + $0x178] sm:$0xff]  ;;  %v98_v18 = vadd.f32 %v515_v15, %v17_v12  ;;  %v516_v31 = vld [vmem:[%s1220_s0 + $0x160] sm:$0xff]  ;;  %v95_v34 = vadd.f32 %v512_v30, %v14_v25 }
   0x5   :  { %v553_v6 = vld [vmem:[%s1220_s0 + $0x288] sm:$0xff]  ;;  %v100_v9 = vadd.f32 %v517_v4, %v19_v1  ;;  %v102_v19 = vadd.f32 %v519_v16, %v21_v14  ;;  %v555_v20 = vld [vmem:[%s1220_s0 + $0x298] sm:$0xff]  ;;  %v552_v32 = vld [vmem:[%s1220_s0 + $0x280] sm:$0xff]  ;;  %v99_v35 = vadd.f32 %v516_v31, %v18_v26 }
   0x6   :  { %v557_v7 = vld [vmem:[%s1220_s0 + $0x2a8] sm:$0xff]  ;;  %v177_v13 = vadd.f32 %v553_v6, %v96_v5  ;;  %v559_v21 = vld [vmem:[%s1220_s0 + $0x2b8] sm:$0xff]  ;;  %v179_v28 = vadd.f32 %v555_v20, %v98_v18  ;;  %v556_v36 = vld [vmem:[%s1220_s0 + $0x2a0] sm:$0xff]  ;;  %v176_v45 = vadd.f32 %v552_v32, %v95_v34 }
   0x7   :  { %v593_v10 = vld [vmem:[%s1220_s0 + $0x3c8] sm:$0xff]  ;;  %v181_v17 = vadd.f32 %v557_v7, %v100_v9  ;;  %v595_v22 = vld [vmem:[%s1220_s0 + $0x3d8] sm:$0xff]  ;;  %v183_v29 = vadd.f32 %v559_v21, %v102_v19  ;;  %v592_v37 = vld [vmem:[%s1220_s0 + $0x3c0] sm:$0xff]  ;;  %v180_v46 = vadd.f32 %v556_v36, %v99_v35 }
   0x8   :  { %v597_v11 = vld [vmem:[%s1220_s0 + $0x3e8] sm:$0xff]  ;;  %v258_v23 = vadd.f32 %v593_v10, %v177_v13  ;;  %v599_v24 = vld [vmem:[%s1220_s0 + $0x3f8] sm:$0xff]  ;;  %v596_v38 = vld [vmem:[%s1220_s0 + $0x3e0] sm:$0xff]  ;;  %v260_v40 = vadd.f32 %v595_v22, %v179_v28  ;;  %v257_v58 = vadd.f32 %v592_v37, %v176_v45 }
   0x9   :  { %v262_v27 = vadd.f32 %v597_v11, %v181_v17  ;;  %v264_v41 = vadd.f32 %v599_v24, %v183_v29  ;;  %v16_v42 = vld [vmem:[%s1220_s0 + $0x10] sm:$0xff]  ;;  %v23_v57 = vld [vmem:[%s1220_s0 + $0x48] sm:$0xff]  ;;  %v261_v59 = vadd.f32 %v596_v38, %v180_v46  ;;  %v25_v11 = vld [vmem:[%s1220_s0 + $0x58] sm:$0xff] }
   0xa   :  { %v298_v33 = vmul.f32 0.25, %v258_v23  ;;  %v20_v43 = vld [vmem:[%s1220_s0 + $0x30] sm:$0xff]  ;;  %v300_v52 = vmul.f32 0.25, %v260_v40  ;;  %v27_v61 = vld [vmem:[%s1220_s0 + $0x68] sm:$0xff]  ;;  %v297_v7 = vmul.f32 0.25, %v257_v58  ;;  %v29_v12 = vld [vmem:[%s1220_s0 + $0x78] sm:$0xff] }
   0xb   :  { %v302_v39 = vmul.f32 0.25, %v262_v27  ;;  %v514_v44 = vld [vmem:[%s1220_s0 + $0x150] sm:$0xff]  ;;  %v304_v53 = vmul.f32 0.25, %v264_v41  ;;  %v521_v62 = vld [vmem:[%s1220_s0 + $0x188] sm:$0xff]  ;;  %v301_v8 = vmul.f32 0.25, %v261_v59  ;;  %v523_v16 = vld [vmem:[%s1220_s0 + $0x198] sm:$0xff] }
   0xc   :  { %v518_v47 = vld [vmem:[%s1220_s0 + $0x170] sm:$0xff]  ;;  %v97_v48 = vadd.f32 %v514_v44, %v16_v42  ;;  %v525_v63 = vld [vmem:[%s1220_s0 + $0x1a8] sm:$0xff]  ;;  %v104_v2 = vadd.f32 %v521_v62, %v23_v57  ;;  %v527_v17 = vld [vmem:[%s1220_s0 + $0x1b8] sm:$0xff]  ;;  %v106_v21 = vadd.f32 %v523_v16, %v25_v11 }
   0xd   :  { %v554_v49 = vld [vmem:[%s1220_s0 + $0x290] sm:$0xff]  ;;  %v638_v51 = vpack.c.bf16 %v302_v39, %v298_v33  ;;  %v101_v54 = vadd.f32 %v518_v47, %v20_v43  ;;  %v660_v0 = vpack.c.bf16 %v304_v53, %v300_v52  ;;  %v108_v3 = vadd.f32 %v525_v63, %v27_v61  ;;  %v561_v4 = vld [vmem:[%s1220_s0 + $0x2c8] sm:$0xff]  ;;  %v563_v18 = vld [vmem:[%s1220_s0 + $0x2d8] sm:$0xff] }
   0xe   :  { %v558_v50 = vld [vmem:[%s1220_s0 + $0x2b0] sm:$0xff]  ;;  %v178_v60 = vadd.f32 %v554_v49, %v97_v48  ;;  %v565_v5 = vld [vmem:[%s1220_s0 + $0x2e8] sm:$0xff]  ;;  %v185_v14 = vadd.f32 %v561_v4, %v104_v2  ;;  %v640_v19 = vpack.c.bf16 %v301_v8, %v297_v7  ;;  %v110_v22 = vadd.f32 %v527_v17, %v29_v12  ;;  %v567_v23 = vld [vmem:[%s1220_s0 + $0x2f8] sm:$0xff] }
   0xf   :  { %v594_v55 = vld [vmem:[%s1220_s0 + $0x3d0] sm:$0xff]  ;;  %639 = vmatprep.subr.bf16.mxu0 %v638_v51  ;;  %v182_v1 = vadd.f32 %v558_v50, %v101_v54  ;;  %v601_v6 = vld [vmem:[%s1220_s0 + $0x408] sm:$0xff]  ;;  %661 = vmatprep.subr.bf16.mxu1 %v660_v0  ;;  %v189_v15 = vadd.f32 %v565_v5, %v108_v3  ;;  %v603_v24 = vld [vmem:[%s1220_s0 + $0x418] sm:$0xff]  ;;  %v187_v32 = vadd.f32 %v563_v18, %v106_v21 }
  0x10   :  { %v598_v56 = vld [vmem:[%s1220_s0 + $0x3f0] sm:$0xff]  ;;  %v259_v9 = vadd.f32 %v594_v55, %v178_v60  ;;  %v605_v10 = vld [vmem:[%s1220_s0 + $0x428] sm:$0xff]  ;;  %v607_v25 = vld [vmem:[%s1220_s0 + $0x438] sm:$0xff]  ;;  %v266_v27 = vadd.f32 %v601_v6, %v185_v14  ;;  %641 = vmatpush1.bf16.msra.mxu0 %v640_v19  ;;  %v191_v33 = vadd.f32 %v567_v23, %v110_v22 }
  0x11   :  { %v263_v13 = vadd.f32 %v598_v56, %v182_v1  ;;  %v270_v28 = vadd.f32 %v605_v10, %v189_v15  ;;  %v22_v29 = vld [vmem:[%s1220_s0 + $0x40] sm:$0xff]  ;;  %v24_v44 = vld [vmem:[%s1220_s0 + $0x50] sm:$0xff]  ;;  %v268_v45 = vadd.f32 %v603_v24, %v187_v32  ;;  %v31_v62 = vld [vmem:[%s1220_s0 + $0x88] sm:$0xff] }
  0x12   :  { %v299_v20 = vmul.f32 0.25, %v259_v9  ;;  %v26_v30 = vld [vmem:[%s1220_s0 + $0x60] sm:$0xff]  ;;  %v306_v39 = vmul.f32 0.25, %v266_v27  ;;  %v272_v46 = vadd.f32 %v607_v25, %v191_v33  ;;  %v28_v48 = vld [vmem:[%s1220_s0 + $0x70] sm:$0xff]  ;;  %v35_v63 = vld [vmem:[%s1220_s0 + $0xa8] sm:$0xff] }
  0x13   :  { %v303_v26 = vmul.f32 0.25, %v263_v13  ;;  %v520_v31 = vld [vmem:[%s1220_s0 + $0x180] sm:$0xff]  ;;  %v310_v40 = vmul.f32 0.25, %v270_v28  ;;  %v522_v49 = vld [vmem:[%s1220_s0 + $0x190] sm:$0xff]  ;;  %v308_v58 = vmul.f32 0.25, %v268_v45  ;;  %v529_v3 = vld [vmem:[%s1220_s0 + $0x1c8] sm:$0xff] }
  0x14   :  { %v524_v34 = vld [vmem:[%s1220_s0 + $0x1a0] sm:$0xff]  ;;  %v103_v35 = vadd.f32 %v520_v31, %v22_v29  ;;  %v526_v50 = vld [vmem:[%s1220_s0 + $0x1b0] sm:$0xff]  ;;  %v105_v53 = vadd.f32 %v522_v49, %v24_v44  ;;  %v312_v59 = vmul.f32 0.25, %v272_v46  ;;  %v533_v4 = vld [vmem:[%s1220_s0 + $0x1e8] sm:$0xff]  ;;  %v112_v8 = vadd.f32 %v529_v3, %v31_v62 }
  0x15   :  { %v560_v36 = vld [vmem:[%s1220_s0 + $0x2c0] sm:$0xff]  ;;  %v662_v38 = vpack.c.bf16 %v303_v26, %v299_v20  ;;  %v107_v41 = vadd.f32 %v524_v34, %v26_v30  ;;  %v642_v51 = vpack.c.bf16 %v310_v40, %v306_v39  ;;  %v109_v54 = vadd.f32 %v526_v50, %v28_v48  ;;  %v562_v55 = vld [vmem:[%s1220_s0 + $0x2d0] sm:$0xff]  ;;  %v569_v5 = vld [vmem:[%s1220_s0 + $0x308] sm:$0xff] }
  0x16   :  { %v564_v37 = vld [vmem:[%s1220_s0 + $0x2e0] sm:$0xff]  ;;  %v184_v47 = vadd.f32 %v560_v36, %v103_v35  ;;  %v566_v56 = vld [vmem:[%s1220_s0 + $0x2f0] sm:$0xff]  ;;  %v186_v1 = vadd.f32 %v562_v55, %v105_v53  ;;  %v664_v6 = vpack.c.bf16 %v312_v59, %v308_v58  ;;  %v116_v9 = vadd.f32 %v533_v4, %v35_v63  ;;  %v573_v10 = vld [vmem:[%s1220_s0 + $0x328] sm:$0xff] }
  0x17   :  { %v600_v42 = vld [vmem:[%s1220_s0 + $0x400] sm:$0xff]  ;;  %663 = vmatpush1.bf16.msra.mxu1 %v662_v38  ;;  %v188_v52 = vadd.f32 %v564_v37, %v107_v41  ;;  %v602_v57 = vld [vmem:[%s1220_s0 + $0x410] sm:$0xff]  ;;  %643 = vmatprep.subr.bf16.mxu0 %v642_v51  ;;  %v190_v2 = vadd.f32 %v566_v56, %v109_v54  ;;  %v609_v11 = vld [vmem:[%s1220_s0 + $0x448] sm:$0xff]  ;;  %v193_v19 = vadd.f32 %v569_v5, %v112_v8 }
  0x18   :  { %v604_v43 = vld [vmem:[%s1220_s0 + $0x420] sm:$0xff]  ;;  %v265_v60 = vadd.f32 %v600_v42, %v184_v47  ;;  %v606_v61 = vld [vmem:[%s1220_s0 + $0x430] sm:$0xff]  ;;  %v613_v12 = vld [vmem:[%s1220_s0 + $0x468] sm:$0xff]  ;;  %v267_v14 = vadd.f32 %v602_v57, %v186_v1  ;;  %665 = vmatprep.subr.bf16.mxu1 %v664_v6  ;;  %v197_v20 = vadd.f32 %v573_v10, %v116_v9 }
  0x19   :  { %v269_v0 = vadd.f32 %v604_v43, %v188_v52  ;;  %v271_v15 = vadd.f32 %v606_v61, %v190_v2  ;;  %v33_v16 = vld [vmem:[%s1220_s0 + $0x98] sm:$0xff]  ;;  %v30_v31 = vld [vmem:[%s1220_s0 + $0x80] sm:$0xff]  ;;  %v274_v32 = vadd.f32 %v609_v11, %v193_v19  ;;  %v32_v49 = vld [vmem:[%s1220_s0 + $0x90] sm:$0xff] }
  0x1a   :  { %v305_v7 = vmul.f32 0.25, %v265_v60  ;;  %v37_v17 = vld [vmem:[%s1220_s0 + $0xb8] sm:$0xff]  ;;  %v307_v26 = vmul.f32 0.25, %v267_v14  ;;  %v278_v33 = vadd.f32 %v613_v12, %v197_v20  ;;  %v34_v35 = vld [vmem:[%s1220_s0 + $0xa0] sm:$0xff]  ;;  %v36_v50 = vld [vmem:[%s1220_s0 + $0xb0] sm:$0xff] }
  0x1b   :  { %v309_v13 = vmul.f32 0.25, %v269_v0  ;;  %v531_v18 = vld [vmem:[%s1220_s0 + $0x1d8] sm:$0xff]  ;;  %v311_v27 = vmul.f32 0.25, %v271_v15  ;;  %v528_v36 = vld [vmem:[%s1220_s0 + $0x1c0] sm:$0xff]  ;;  %v314_v45 = vmul.f32 0.25, %v274_v32  ;;  %v530_v54 = vld [vmem:[%s1220_s0 + $0x1d0] sm:$0xff] }
  0x1c   :  { %v535_v21 = vld [vmem:[%s1220_s0 + $0x1f8] sm:$0xff]  ;;  %v114_v22 = vadd.f32 %v531_v18, %v33_v16  ;;  %v532_v37 = vld [vmem:[%s1220_s0 + $0x1e0] sm:$0xff]  ;;  %v111_v40 = vadd.f32 %v528_v36, %v30_v31  ;;  %v318_v46 = vmul.f32 0.25, %v278_v33  ;;  %v534_v55 = vld [vmem:[%s1220_s0 + $0x1f0] sm:$0xff]  ;;  %v113_v59 = vadd.f32 %v530_v54, %v32_v49 }
  0x1d   :  { %v571_v23 = vld [vmem:[%s1220_s0 + $0x318] sm:$0xff]  ;;  %v644_v25 = vpack.c.bf16 %v309_v13, %v305_v7  ;;  %v118_v28 = vadd.f32 %v535_v21, %v37_v17  ;;  %v666_v38 = vpack.c.bf16 %v311_v27, %v307_v26  ;;  %v115_v41 = vadd.f32 %v532_v37, %v34_v35  ;;  %v568_v42 = vld [vmem:[%s1220_s0 + $0x300] sm:$0xff]  ;;  %v570_v56 = vld [vmem:[%s1220_s0 + $0x310] sm:$0xff] }
  0x1e   :  { %v575_v24 = vld [vmem:[%s1220_s0 + $0x338] sm:$0xff]  ;;  %v195_v34 = vadd.f32 %v571_v23, %v114_v22  ;;  %v572_v43 = vld [vmem:[%s1220_s0 + $0x320] sm:$0xff]  ;;  %v192_v52 = vadd.f32 %v568_v42, %v111_v40  ;;  %v646_v57 = vpack.c.bf16 %v318_v46, %v314_v45  ;;  %v117_v60 = vadd.f32 %v534_v55, %v36_v50  ;;  %v574_v61 = vld [vmem:[%s1220_s0 + $0x330] sm:$0xff] }
  0x1f   :  { %v611_v29 = vld [vmem:[%s1220_s0 + $0x458] sm:$0xff]  ;;  %645 = vmatpush1.bf16.msra.mxu0 %v644_v25  ;;  %v199_v39 = vadd.f32 %v575_v24, %v118_v28  ;;  %v608_v44 = vld [vmem:[%s1220_s0 + $0x440] sm:$0xff]  ;;  %667 = vmatpush1.bf16.msra.mxu1 %v666_v38  ;;  %v196_v53 = vadd.f32 %v572_v43, %v115_v41  ;;  %v610_v62 = vld [vmem:[%s1220_s0 + $0x450] sm:$0xff]  ;;  %v194_v6 = vadd.f32 %v570_v56, %v113_v59 }
  0x20   :  { %v615_v30 = vld [vmem:[%s1220_s0 + $0x478] sm:$0xff]  ;;  %v276_v47 = vadd.f32 %v611_v29, %v195_v34  ;;  %v612_v48 = vld [vmem:[%s1220_s0 + $0x460] sm:$0xff]  ;;  %v614_v63 = vld [vmem:[%s1220_s0 + $0x470] sm:$0xff]  ;;  %v273_v1 = vadd.f32 %v608_v44, %v192_v52  ;;  %647 = vmatprep.subr.bf16.mxu0 %v646_v57  ;;  %v198_v7 = vadd.f32 %v574_v61, %v117_v60 }
  0x21   :  { %v280_v51 = vadd.f32 %v615_v30, %v199_v39  ;;  %v277_v2 = vadd.f32 %v612_v48, %v196_v53  ;;  %v39_v3 = vld [vmem:[%s1220_s0 + $0xc8] sm:$0xff]  ;;  %v41_v18 = vld [vmem:[%s1220_s0 + $0xd8] sm:$0xff]  ;;  %v275_v19 = vadd.f32 %v610_v62, %v194_v6  ;;  %v38_v36 = vld [vmem:[%s1220_s0 + $0xc0] sm:$0xff] }
  0x22   :  { %v316_v58 = vmul.f32 0.25, %v276_v47  ;;  %v43_v4 = vld [vmem:[%s1220_s0 + $0xe8] sm:$0xff]  ;;  %v313_v13 = vmul.f32 0.25, %v273_v1  ;;  %v279_v20 = vadd.f32 %v614_v63, %v198_v7  ;;  %v45_v22 = vld [vmem:[%s1220_s0 + $0xf8] sm:$0xff]  ;;  %v42_v37 = vld [vmem:[%s1220_s0 + $0xe0] sm:$0xff] }
  0x23   :  { %v320_v0 = vmul.f32 0.25, %v280_v51  ;;  %v537_v5 = vld [vmem:[%s1220_s0 + $0x208] sm:$0xff]  ;;  %v317_v14 = vmul.f32 0.25, %v277_v2  ;;  %v539_v23 = vld [vmem:[%s1220_s0 + $0x218] sm:$0xff]  ;;  %v315_v32 = vmul.f32 0.25, %v275_v19  ;;  %v536_v41 = vld [vmem:[%s1220_s0 + $0x200] sm:$0xff] }
  0x24   :  { %v541_v8 = vld [vmem:[%s1220_s0 + $0x228] sm:$0xff]  ;;  %v120_v9 = vadd.f32 %v537_v5, %v39_v3  ;;  %v543_v24 = vld [vmem:[%s1220_s0 + $0x238] sm:$0xff]  ;;  %v122_v27 = vadd.f32 %v539_v23, %v41_v18  ;;  %v319_v33 = vmul.f32 0.25, %v279_v20  ;;  %v540_v42 = vld [vmem:[%s1220_s0 + $0x220] sm:$0xff]  ;;  %v119_v46 = vadd.f32 %v536_v41, %v38_v36 }
  0x25   :  { %v577_v10 = vld [vmem:[%s1220_s0 + $0x348] sm:$0xff]  ;;  %v668_v12 = vpack.c.bf16 %v320_v0, %v316_v58  ;;  %v124_v15 = vadd.f32 %v541_v8, %v43_v4  ;;  %v648_v25 = vpack.c.bf16 %v317_v14, %v313_v13  ;;  %v126_v28 = vadd.f32 %v543_v24, %v45_v22  ;;  %v579_v29 = vld [vmem:[%s1220_s0 + $0x358] sm:$0xff]  ;;  %v576_v43 = vld [vmem:[%s1220_s0 + $0x340] sm:$0xff] }
  0x26   :  { %v581_v11 = vld [vmem:[%s1220_s0 + $0x368] sm:$0xff]  ;;  %v201_v21 = vadd.f32 %v577_v10, %v120_v9  ;;  %v583_v30 = vld [vmem:[%s1220_s0 + $0x378] sm:$0xff]  ;;  %v203_v39 = vadd.f32 %v579_v29, %v122_v27  ;;  %v670_v44 = vpack.c.bf16 %v319_v33, %v315_v32  ;;  %v123_v47 = vadd.f32 %v540_v42, %v42_v37  ;;  %v580_v48 = vld [vmem:[%s1220_s0 + $0x360] sm:$0xff] }
  0x27   :  { %v617_v16 = vld [vmem:[%s1220_s0 + $0x488] sm:$0xff]  ;;  %669 = vmatprep.subr.bf16.mxu1 %v668_v12  ;;  %v205_v26 = vadd.f32 %v581_v11, %v124_v15  ;;  %v619_v31 = vld [vmem:[%s1220_s0 + $0x498] sm:$0xff]  ;;  %649 = vmatpush1.bf16.msra.mxu0 %v648_v25  ;;  %v207_v40 = vadd.f32 %v583_v30, %v126_v28  ;;  %v616_v49 = vld [vmem:[%s1220_s0 + $0x480] sm:$0xff]  ;;  %v200_v57 = vadd.f32 %v576_v43, %v119_v46 }
  0x28   :  { %v621_v17 = vld [vmem:[%s1220_s0 + $0x4a8] sm:$0xff]  ;;  %v282_v34 = vadd.f32 %v617_v16, %v201_v21  ;;  %v623_v35 = vld [vmem:[%s1220_s0 + $0x4b8] sm:$0xff]  ;;  %v620_v50 = vld [vmem:[%s1220_s0 + $0x4a0] sm:$0xff]  ;;  %v284_v52 = vadd.f32 %v619_v31, %v203_v39  ;;  %671 = vmatpush1.bf16.msra.mxu1 %v670_v44  ;;  %v204_v58 = vadd.f32 %v580_v48, %v123_v47 }
  0x29   :  { %v286_v38 = vadd.f32 %v621_v17, %v205_v26  ;;  %v288_v53 = vadd.f32 %v623_v35, %v207_v40  ;;  %v40_v54 = vld [vmem:[%s1220_s0 + $0xd0] sm:$0xff]  ;;  %v47_v5 = vld [vmem:[%s1220_s0 + $0x108] sm:$0xff]  ;;  %v281_v6 = vadd.f32 %v616_v49, %v200_v57  ;;  %vm1118_vm2 = vmpackc.low %vm348_vm0, %vm688_vm1 }
  0x2a   :  { %v322_v45 = vmul.f32 0.25, %v282_v34  ;;  %v44_v55 = vld [vmem:[%s1220_s0 + $0xf0] sm:$0xff]  ;;  %v324_v0 = vmul.f32 0.25, %v284_v52  ;;  %v285_v7 = vadd.f32 %v620_v50, %v204_v58  ;;  %v51_v9 = vld [vmem:[%s1220_s0 + $0x128] sm:$0x7]  ;;  %v49_v24 = vld [vmem:[%s1220_s0 + $0x118] sm:$0xff] }
  0x2b   :  { %v326_v51 = vmul.f32 0.25, %v286_v38  ;;  %v538_v56 = vld [vmem:[%s1220_s0 + $0x210] sm:$0xff]  ;;  %v328_v1 = vmul.f32 0.25, %v288_v53  ;;  %v545_v10 = vld [vmem:[%s1220_s0 + $0x248] sm:$0xff]  ;;  %v321_v19 = vmul.f32 0.25, %v281_v6  ;;  %v547_v29 = vld [vmem:[%s1220_s0 + $0x258] sm:$0xff] }
  0x2c   :  { %v542_v59 = vld [vmem:[%s1220_s0 + $0x230] sm:$0xff]  ;;  %v121_v60 = vadd.f32 %v538_v56, %v40_v54  ;;  %v549_v11 = vld [vmem:[%s1220_s0 + $0x268] sm:$0x7]  ;;  %v128_v14 = vadd.f32 %v545_v10, %v47_v5  ;;  %v325_v20 = vmul.f32 0.25, %v285_v7  ;;  %v53_v28 = vld [vmem:[%s1220_s0 + $0x138] sm:$0x7]  ;;  %v130_v33 = vadd.f32 %v547_v29, %v49_v24 }
  0x2d   :  { %v578_v61 = vld [vmem:[%s1220_s0 + $0x350] sm:$0xff]  ;;  %v650_v63 = vpack.c.bf16 %v326_v51, %v322_v45  ;;  %v125_v2 = vadd.f32 %v542_v59, %v44_v55  ;;  %v672_v12 = vpack.c.bf16 %v328_v1, %v324_v0  ;;  %v132_v15 = vadd.f32 %v549_v11, %v51_v9  ;;  %v585_v16 = vld [vmem:[%s1220_s0 + $0x388] sm:$0xff]  ;;  %v551_v30 = vld [vmem:[%s1220_s0 + $0x278] sm:$0x7] }
  0x2e   :  { %v582_v62 = vld [vmem:[%s1220_s0 + $0x370] sm:$0xff]  ;;  %v202_v8 = vadd.f32 %v578_v61, %v121_v60  ;;  %v589_v17 = vld [vmem:[%s1220_s0 + $0x3a8] sm:$0x7]  ;;  %v209_v26 = vadd.f32 %v585_v16, %v128_v14  ;;  %v652_v31 = vpack.c.bf16 %v325_v20, %v321_v19  ;;  %v134_v34 = vadd.f32 %v551_v30, %v53_v28  ;;  %v587_v35 = vld [vmem:[%s1220_s0 + $0x398] sm:$0xff] }
  0x2f   :  { %v618_v3 = vld [vmem:[%s1220_s0 + $0x490] sm:$0xff]  ;;  %651 = vmatprep.subr.bf16.mxu0 %v650_v63  ;;  %v206_v13 = vadd.f32 %v582_v62, %v125_v2  ;;  %v625_v18 = vld [vmem:[%s1220_s0 + $0x4c8] sm:$0xff]  ;;  %673 = vmatprep.subr.bf16.mxu1 %v672_v12  ;;  %v213_v27 = vadd.f32 %v589_v17, %v132_v15  ;;  %v591_v36 = vld [vmem:[%s1220_s0 + $0x3b8] sm:$0x7]  ;;  %v211_v44 = vadd.f32 %v587_v35, %v130_v33 }
  0x30   :  { %v622_v4 = vld [vmem:[%s1220_s0 + $0x4b0] sm:$0xff]  ;;  %v283_v21 = vadd.f32 %v618_v3, %v202_v8  ;;  %v629_v22 = vld [vmem:[%s1220_s0 + $0x4e8] sm:$0x7]  ;;  %v627_v37 = vld [vmem:[%s1220_s0 + $0x4d8] sm:$0xff]  ;;  %v290_v39 = vadd.f32 %v625_v18, %v209_v26  ;;  %653 = vmatpush1.bf16.msra.mxu0 %v652_v31  ;;  %v215_v45 = vadd.f32 %v591_v36, %v134_v34 }
  0x31   :  { %v287_v25 = vadd.f32 %v622_v4, %v206_v13  ;;  %v294_v40 = vadd.f32 %v629_v22, %v213_v27  ;;  %v631_v41 = vld [vmem:[%s1220_s0 + $0x4f8] sm:$0x7]  ;;  %v46_v42 = vld [vmem:[%s1220_s0 + $0x100] sm:$0xff]  ;;  %v48_v55 = vld [vmem:[%s1220_s0 + $0x110] sm:$0xff]  ;;  %v292_v56 = vadd.f32 %v627_v37, %v211_v44 }
  0x32   :  { %v323_v32 = vmul.f32 0.25, %v283_v21  ;;  %v50_v43 = vld [vmem:[%s1220_s0 + $0x120] sm:$0x7]  ;;  %v330_v50 = vmul.f32 0.25, %v290_v39  ;;  %v296_v57 = vadd.f32 %v631_v41, %v215_v45  ;;  %v52_v60 = vld [vmem:[%s1220_s0 + $0x130] sm:$0x7] }
  0x33   :  { %v327_v38 = vmul.f32 0.25, %v287_v25  ;;  %v544_v46 = vld [vmem:[%s1220_s0 + $0x240] sm:$0xff]  ;;  %v334_v51 = vmul.f32 0.25, %v294_v40  ;;  %v546_v61 = vld [vmem:[%s1220_s0 + $0x250] sm:$0xff]  ;;  %v332_v4 = vmul.f32 0.25, %v292_v56 }
  0x34   :  { %v548_v47 = vld [vmem:[%s1220_s0 + $0x260] sm:$0x7]  ;;  %v127_v52 = vadd.f32 %v544_v46, %v46_v42  ;;  %v550_v0 = vld [vmem:[%s1220_s0 + $0x270] sm:$0x7]  ;;  %v129_v1 = vadd.f32 %v546_v61, %v48_v55  ;;  %v336_v5 = vmul.f32 0.25, %v296_v57 }
  0x35   :  { %v584_v48 = vld [vmem:[%s1220_s0 + $0x380] sm:$0xff]  ;;  %v674_v49 = vpack.c.bf16 %v327_v38, %v323_v32  ;;  %v131_v58 = vadd.f32 %v548_v47, %v50_v43  ;;  %v654_v62 = vpack.c.bf16 %v334_v51, %v330_v50  ;;  %v586_v2 = vld [vmem:[%s1220_s0 + $0x390] sm:$0xff]  ;;  %v133_v7 = vadd.f32 %v550_v0, %v52_v60 }
  0x36   :  { %v588_v53 = vld [vmem:[%s1220_s0 + $0x3a0] sm:$0x7]  ;;  %v208_v63 = vadd.f32 %v584_v48, %v127_v52  ;;  %v590_v3 = vld [vmem:[%s1220_s0 + $0x3b0] sm:$0x7]  ;;  %v210_v10 = vadd.f32 %v586_v2, %v129_v1  ;;  %v676_v13 = vpack.c.bf16 %v336_v5, %v332_v4 }
  0x37   :  { %v624_v54 = vld [vmem:[%s1220_s0 + $0x4c0] sm:$0xff]  ;;  %675 = vmatpush1.bf16.msra.mxu1 %v674_v49  ;;  %v212_v6 = vadd.f32 %v588_v53, %v131_v58  ;;  %v626_v8 = vld [vmem:[%s1220_s0 + $0x4d0] sm:$0xff]  ;;  %656 = vmatprep.subr.msk.bf16.mxu0 %vm1118_vm2, %v654_v62  ;;  %v214_v15 = vadd.f32 %v590_v3, %v133_v7 }
  0x38   :  { %v628_v59 = vld [vmem:[%s1220_s0 + $0x4e0] sm:$0x7]  ;;  %v289_v9 = vadd.f32 %v624_v54, %v208_v63  ;;  %v630_v11 = vld [vmem:[%s1220_s0 + $0x4f0] sm:$0x7]  ;;  %v291_v17 = vadd.f32 %v626_v8, %v210_v10  ;;  %678 = vmatprep.subr.msk.bf16.mxu1 %vm1118_vm2, %v676_v13 }
  0x39   :  { %v338_v12 = vld [vmem:[%s1221_s2] sm:$0x3f]  ;;  %v293_v14 = vadd.f32 %v628_v59, %v212_v6  ;;  %v295_v19 = vadd.f32 %v630_v11, %v214_v15 }
  0x3a   :  { %341 = vperm.xlu0 %685, %v338_v12   ;;  %v329_v16 = vmul.f32 0.25, %v289_v9  ;;  %v331_v20 = vmul.f32 0.25, %v291_v17  ;;  %v337_v25 = vld [vmem:[%s1222_s1] sm:$0x3f] }
  0x3b   :  { %v333_v18 = vmul.f32 0.25, %v293_v14  ;;  %v335_v22 = vmul.f32 0.25, %v295_v19 }
  0x3d   :  { %v657_v21 = vpack.c.bf16 %v333_v18, %v329_v16  ;;  %v679_v24 = vpack.c.bf16 %v335_v22, %v331_v20 }
  0x3f   :  { %659 = vmatpush1.bf16.msk.msra.mxu0 %vm1118_vm2, %v657_v21  ;;  %681 = vmatpush1.bf16.msk.msra.mxu1 %vm1118_vm2, %v679_v24 }
  0x42   :  { %634 = vmatmul.mubr.msk.f32.vlgmr.msra.gmra.mrb[0].mxu0 %vm344_vm3, %v337_v25  ;;  %637 = vmatmul.mubr.msk.f32.vlgmr.msra.gmra.mrb[0].mxu1 %vm344_vm3, %v337_v25 }
  0xb9   :  { %v342_v26 = vpop.permute.xlu0 %341 }
 0x115   :  { %v427_v27 = vpop.f32.mrb[0].mxu0  ;;  %v498_v30 = vpop.f32.mrb[0].mxu1 }
 0x116   :  { %v428_v28 = vadd.f32 %v427_v27, %v342_v26  ;;  %v429_v29 = vpop.f32.mrb[1].mxu0  ;;  %v499_v32 = vadd.f32 %v498_v30, %v342_v26  ;;  %v500_v33 = vpop.f32.mrb[1].mxu1 }
 0x117   :  { %v430_v31 = vadd.f32 %v429_v29, %v342_v26  ;;  %v501_v23 = vadd.f32 %v500_v33, %v342_v26 }
 0x118   :  { %503 = vst [vmem:[%s1223_s3] sm:$0x3f] %v428_v28  ;;  %505 = vst [vmem:[%s1223_s3 + $0x10] sm:$0x3f] %v499_v32 }
 0x119   :  { %504 = vst [vmem:[%s1223_s3 + $0x8] sm:$0x3f] %v430_v31  ;;  %507 = vst.msk [vmem:[%s1223_s3 + $0x18] sm:$0x3f] %vm506_vm4, %v501_v23 }

// kernel: lenet5_forward.3
= control target key start
LH: loop header
LB: loop body
LE: loop exit
PB: predicated region body
PF: predicated region fallthrough
CT: control target
= control target key end

     0   :  { %v4525_v3 = vmov 0.0|0.0   ;;  %v4526_v12 = vmov 0   ;;  %vm204_vm0 = vcmask 179200   ;;  %vm373_vm1 = vcmask 1040384   ;;  %s5677_s0 = inlined_call_operand.vmem [shape: f32[4,150,50], index: 0, kind: input, shape index: {}]   ;;  %s5678_s1 = inlined_call_operand.vmem [shape: f32[16,150], index: 1, kind: input, shape index: {}]   ;;  %s5679_s2 = inlined_call_operand.vmem [shape: f32[16,1], index: 2, kind: input, shape index: {}]   ;;  %s5680_s3 = inlined_call_operand.vmem [shape: f32[400,120], index: 3, kind: input, shape index: {}]   ;;  %s5681_s4 = inlined_call_operand.vmem [shape: f32[1,120], index: 4, kind: input, shape index: {}]   ;;  %s5682_s5 = inlined_call_operand.vmem [shape: f32[120,84], index: 5, kind: input, shape index: {}]   ;;  %s5683_s6 = inlined_call_operand.vmem [shape: f32[1,84], index: 6, kind: input, shape index: {}]   ;;  %s5684_s7 = inlined_call_operand.vmem [shape: f32[84,10], index: 7, kind: input, shape index: {}]   ;;  %s5685_s8 = inlined_call_operand.vmem [shape: f32[1,10], index: 8, kind: input, shape index: {}]   ;;  %s5686_s9 = inlined_call_operand.hbm [shape: f32[2,10], index: 9, kind: output, shape index: {}]  }
   0x1   :  { %v33_v0 = vld [vmem:[%s5677_s0] sm:$0xff]  ;;  %v34_v1 = vld [vmem:[%s5677_s0 + $0x8] sm:$0xff]  ;;  %v3294_v2 = vld [vmem:[%s5677_s0 + $0x98] sm:$0xff]  ;;  %4108 = vmatprep.subr.bf16.mxu0 %v4525_v3  ;;  %4135 = vmatprep.subr.bf16.mxu1 %v4525_v3 }
   0x2   :  { %v3295_v4 = vld [vmem:[%s5677_s0 + $0xa0] sm:$0xff]  ;;  %v72_v5 = vadd.f32 %v3294_v2, %v33_v0  ;;  %v3313_v6 = vld [vmem:[%s5677_s0 + $0x130] sm:$0xff]  ;;  %v3314_v7 = vld [vmem:[%s5677_s0 + $0x138] sm:$0xff]  ;;  %4500 = vset.pattern.permute.xlu0 %v4526_v12 }
   0x3   :  { %v73_v8 = vadd.f32 %v3295_v4, %v34_v1  ;;  %v3332_v9 = vld [vmem:[%s5677_s0 + $0x1c8] sm:$0xff]  ;;  %v3333_v10 = vld [vmem:[%s5677_s0 + $0x1d0] sm:$0xff]  ;;  %v36_v14 = vld [vmem:[%s5677_s0 + $0x18] sm:$0xff] }
   0x4   :  { %v35_v11 = vld [vmem:[%s5677_s0 + $0x10] sm:$0xff]  ;;  %v111_v13 = vadd.f32 %v3313_v6, %v72_v5  ;;  %v3296_v15 = vld [vmem:[%s5677_s0 + $0xa8] sm:$0xff]  ;;  %v3315_v20 = vld [vmem:[%s5677_s0 + $0x140] sm:$0xff] }
   0x5   :  { %v3297_v16 = vld [vmem:[%s5677_s0 + $0xb0] sm:$0xff]  ;;  %v112_v17 = vadd.f32 %v3314_v7, %v73_v8  ;;  %v74_v18 = vadd.f32 %v3296_v15, %v35_v11  ;;  %v3316_v21 = vld [vmem:[%s5677_s0 + $0x148] sm:$0xff]  ;;  %v3334_v22 = vld [vmem:[%s5677_s0 + $0x1d8] sm:$0xff] }
   0x6   :  { %v75_v19 = vadd.f32 %v3297_v16, %v36_v14  ;;  %v150_v23 = vadd.f32 %v3332_v9, %v111_v13  ;;  %v3335_v24 = vld [vmem:[%s5677_s0 + $0x1e0] sm:$0xff]  ;;  %v38_v26 = vld [vmem:[%s5677_s0 + $0x28] sm:$0xff]  ;;  %v3298_v30 = vld [vmem:[%s5677_s0 + $0xb8] sm:$0xff] }
   0x7   :  { %v37_v25 = vld [vmem:[%s5677_s0 + $0x20] sm:$0xff]  ;;  %v151_v27 = vadd.f32 %v3333_v10, %v112_v17  ;;  %v113_v28 = vadd.f32 %v3315_v20, %v74_v18  ;;  %v3317_v32 = vld [vmem:[%s5677_s0 + $0x150] sm:$0xff]  ;;  %v3318_v36 = vld [vmem:[%s5677_s0 + $0x158] sm:$0xff] }
   0x8   :  { %v114_v29 = vadd.f32 %v3316_v21, %v75_v19  ;;  %v3299_v31 = vld [vmem:[%s5677_s0 + $0xc0] sm:$0xff]  ;;  %v169_v33 = vmul.f32 0.25, %v150_v23  ;;  %v76_v34 = vadd.f32 %v3298_v30, %v37_v25  ;;  %v3336_v37 = vld [vmem:[%s5677_s0 + $0x1e8] sm:$0xff]  ;;  %v3337_v38 = vld [vmem:[%s5677_s0 + $0x1f0] sm:$0xff] }
   0x9   :  { %v77_v35 = vadd.f32 %v3299_v31, %v38_v26  ;;  %v170_v39 = vmul.f32 0.25, %v151_v27  ;;  %v152_v40 = vadd.f32 %v3334_v22, %v113_v28  ;;  %v39_v42 = vld [vmem:[%s5677_s0 + $0x30] sm:$0xff]  ;;  %v40_v43 = vld [vmem:[%s5677_s0 + $0x38] sm:$0xff]  ;;  %v3300_v44 = vld [vmem:[%s5677_s0 + $0xc8] sm:$0xff] }
   0xa   :  { %v153_v41 = vadd.f32 %v3335_v24, %v114_v29  ;;  %v115_v45 = vadd.f32 %v3317_v32, %v76_v34  ;;  %v3301_v47 = vld [vmem:[%s5677_s0 + $0xd0] sm:$0xff]  ;;  %v78_v48 = vadd.f32 %v3300_v44, %v39_v42  ;;  %v3319_v49 = vld [vmem:[%s5677_s0 + $0x160] sm:$0xff]  ;;  %v3320_v50 = vld [vmem:[%s5677_s0 + $0x168] sm:$0xff] }
   0xb   :  { %v116_v46 = vadd.f32 %v3318_v36, %v77_v35  ;;  %v4109_v51 = vpack.c.bf16 %v170_v39, %v169_v33  ;;  %v171_v52 = vmul.f32 0.25, %v152_v40  ;;  %v79_v54 = vadd.f32 %v3301_v47, %v40_v43  ;;  %v3338_v55 = vld [vmem:[%s5677_s0 + $0x1f8] sm:$0xff]  ;;  %v3339_v56 = vld [vmem:[%s5677_s0 + $0x200] sm:$0xff]  ;;  %v42_v61 = vld [vmem:[%s5677_s0 + $0x48] sm:$0xff] }
   0xc   :  { %v172_v53 = vmul.f32 0.25, %v153_v41  ;;  %v41_v57 = vld [vmem:[%s5677_s0 + $0x40] sm:$0xff]  ;;  %v154_v58 = vadd.f32 %v3336_v37, %v115_v45  ;;  %v117_v60 = vadd.f32 %v3319_v49, %v78_v48  ;;  %v3302_v62 = vld [vmem:[%s5677_s0 + $0xd8] sm:$0xff]  ;;  %v3321_v5 = vld [vmem:[%s5677_s0 + $0x170] sm:$0xff] }
   0xd   :  { %v155_v59 = vadd.f32 %v3337_v38, %v116_v46  ;;  %v3303_v63 = vld [vmem:[%s5677_s0 + $0xe0] sm:$0xff]  ;;  %4110 = vmatpush1.bf16.msra.mxu0 %v4109_v51  ;;  %v118_v1 = vadd.f32 %v3320_v50, %v79_v54  ;;  %v80_v2 = vadd.f32 %v3302_v62, %v41_v57  ;;  %v3322_v6 = vld [vmem:[%s5677_s0 + $0x178] sm:$0xff]  ;;  %v3340_v7 = vld [vmem:[%s5677_s0 + $0x208] sm:$0xff] }
   0xe   :  { %v4112_v0 = vpack.c.bf16 %v172_v53, %v171_v52  ;;  %v81_v4 = vadd.f32 %v3303_v63, %v42_v61  ;;  %4111 = vmatprep.subr.bf16.mxu0 %v4525_v3  ;;  %v173_v8 = vmul.f32 0.25, %v154_v58  ;;  %v156_v10 = vadd.f32 %v3338_v55, %v117_v60  ;;  %v3341_v11 = vld [vmem:[%s5677_s0 + $0x210] sm:$0xff]  ;;  %v44_v13 = vld [vmem:[%s5677_s0 + $0x58] sm:$0xff]  ;;  %v3304_v17 = vld [vmem:[%s5677_s0 + $0xe8] sm:$0xff] }
   0xf   :  { %v174_v9 = vmul.f32 0.25, %v155_v59  ;;  %v43_v12 = vld [vmem:[%s5677_s0 + $0x50] sm:$0xff]  ;;  %v157_v14 = vadd.f32 %v3339_v56, %v118_v1  ;;  %v119_v15 = vadd.f32 %v3321_v5, %v80_v2  ;;  %v3323_v19 = vld [vmem:[%s5677_s0 + $0x180] sm:$0xff]  ;;  %v3324_v23 = vld [vmem:[%s5677_s0 + $0x188] sm:$0xff] }
  0x10   :  { %v120_v16 = vadd.f32 %v3322_v6, %v81_v4  ;;  %v3305_v18 = vld [vmem:[%s5677_s0 + $0xf0] sm:$0xff]  ;;  %v175_v20 = vmul.f32 0.25, %v156_v10  ;;  %v82_v21 = vadd.f32 %v3304_v17, %v43_v12  ;;  %v3342_v24 = vld [vmem:[%s5677_s0 + $0x218] sm:$0xff]  ;;  %v3343_v25 = vld [vmem:[%s5677_s0 + $0x220] sm:$0xff] }
  0x11   :  { %v83_v22 = vadd.f32 %v3305_v18, %v44_v13  ;;  %4113 = vmatpush1.bf16.msra.mxu0 %v4112_v0  ;;  %v4115_v26 = vpack.c.bf16 %v174_v9, %v173_v8  ;;  %v176_v27 = vmul.f32 0.25, %v157_v14  ;;  %v158_v28 = vadd.f32 %v3340_v7, %v119_v15  ;;  %v45_v30 = vld [vmem:[%s5677_s0 + $0x60] sm:$0xff]  ;;  %v46_v31 = vld [vmem:[%s5677_s0 + $0x68] sm:$0xff]  ;;  %v3306_v32 = vld [vmem:[%s5677_s0 + $0xf8] sm:$0xff] }
  0x12   :  { %v159_v29 = vadd.f32 %v3341_v11, %v120_v16  ;;  %4114 = vmatprep.subr.bf16.mxu0 %v4525_v3  ;;  %v121_v33 = vadd.f32 %v3323_v19, %v82_v21  ;;  %v3307_v35 = vld [vmem:[%s5677_s0 + $0x100] sm:$0xff]  ;;  %v84_v36 = vadd.f32 %v3306_v32, %v45_v30  ;;  %v3325_v37 = vld [vmem:[%s5677_s0 + $0x190] sm:$0xff]  ;;  %v3326_v38 = vld [vmem:[%s5677_s0 + $0x198] sm:$0xff] }
  0x13   :  { %v122_v34 = vadd.f32 %v3324_v23, %v83_v22  ;;  %v4118_v39 = vpack.c.bf16 %v176_v27, %v175_v20  ;;  %v85_v40 = vadd.f32 %v3307_v35, %v46_v31  ;;  %v3344_v41 = vld [vmem:[%s5677_s0 + $0x228] sm:$0xff]  ;;  %v47_v42 = vld [vmem:[%s5677_s0 + $0x70] sm:$0xff]  ;;  %v177_v43 = vmul.f32 0.25, %v158_v28  ;;  %v48_v47 = vld [vmem:[%s5677_s0 + $0x78] sm:$0xff] }
  0x14   :  { %v160_v44 = vadd.f32 %v3342_v24, %v121_v33  ;;  %v123_v46 = vadd.f32 %v3325_v37, %v84_v36  ;;  %v3308_v48 = vld [vmem:[%s5677_s0 + $0x108] sm:$0xff]  ;;  %v3309_v49 = vld [vmem:[%s5677_s0 + $0x110] sm:$0xff]  ;;  %v178_v50 = vmul.f32 0.25, %v159_v29  ;;  %v3327_v55 = vld [vmem:[%s5677_s0 + $0x1a0] sm:$0xff] }
  0x15   :  { %v161_v45 = vadd.f32 %v3343_v25, %v122_v34  ;;  %4116 = vmatpush1.bf16.msra.mxu0 %v4115_v26  ;;  %v124_v51 = vadd.f32 %v3326_v38, %v85_v40  ;;  %v3345_v52 = vld [vmem:[%s5677_s0 + $0x230] sm:$0xff]  ;;  %v86_v53 = vadd.f32 %v3308_v48, %v47_v42  ;;  %v87_v54 = vadd.f32 %v3309_v49, %v48_v47  ;;  %v3328_v56 = vld [vmem:[%s5677_s0 + $0x1a8] sm:$0xff]  ;;  %v49_v57 = vld [vmem:[%s5677_s0 + $0x80] sm:$0xff] }
  0x16   :  { %4117 = vmatprep.subr.bf16.mxu0 %v4525_v3  ;;  %v50_v58 = vld [vmem:[%s5677_s0 + $0x88] sm:$0xff]  ;;  %v179_v59 = vmul.f32 0.25, %v160_v44  ;;  %v162_v61 = vadd.f32 %v3344_v41, %v123_v46  ;;  %v3310_v62 = vld [vmem:[%s5677_s0 + $0x118] sm:$0xff]  ;;  %v3311_v63 = vld [vmem:[%s5677_s0 + $0x120] sm:$0xff]  ;;  %v4121_v6 = vpack.c.bf16 %v178_v50, %v177_v43 }
  0x17   :  { %v180_v60 = vmul.f32 0.25, %v161_v45  ;;  %v163_v0 = vadd.f32 %v3345_v52, %v124_v51  ;;  %v125_v1 = vadd.f32 %v3327_v55, %v86_v53  ;;  %v126_v2 = vadd.f32 %v3328_v56, %v87_v54  ;;  %v3346_v4 = vld [vmem:[%s5677_s0 + $0x238] sm:$0xff]  ;;  %v3347_v7 = vld [vmem:[%s5677_s0 + $0x240] sm:$0xff]  ;;  %v3329_v9 = vld [vmem:[%s5677_s0 + $0x1b0] sm:$0xff] }
  0x18   :  { %v88_v5 = vadd.f32 %v3310_v62, %v49_v57  ;;  %v89_v8 = vadd.f32 %v3311_v63, %v50_v58  ;;  %v189_v10 = vld [vmem:[%s5678_s1 + $0x8] sm:$0xff]  ;;  %v3330_v11 = vld [vmem:[%s5677_s0 + $0x1b8] sm:$0xff]  ;;  %v181_v13 = vmul.f32 0.25, %v162_v61  ;;  %v51_v14 = vld [vmem:[%s5677_s0 + $0x90] sm:$0x3f] }
  0x19   :  { %4119 = vmatpush1.bf16.msra.mxu0 %v4118_v39  ;;  %3352 = vmatprep.mubr.msk.f32.mxu0 %vm204_vm0, %v189_v10  ;;  %v4124_v12 = vpack.c.bf16 %v180_v60, %v179_v59  ;;  %v192_v15 = vld [vmem:[%s5679_s2] sm:$0xff]  ;;  %v182_v16 = vmul.f32 0.25, %v163_v0  ;;  %v164_v17 = vadd.f32 %v3346_v4, %v125_v1  ;;  %v165_v18 = vadd.f32 %v3347_v7, %v126_v2  ;;  %v3312_v20 = vld [vmem:[%s5677_s0 + $0x128] sm:$0x3f]  ;;  %v292_v26 = vld [vmem:[%s5680_s3 + $0x10] sm:$0xff] }
  0x1a   :  { %4120 = vmatprep.subr.bf16.mxu0 %v4525_v3  ;;  %v127_v19 = vadd.f32 %v3329_v9, %v88_v5  ;;  %196 = vperm.xlu0 %4500, %v192_v15   ;;  %v290_v21 = vld [vmem:[%s5680_s3] sm:$0xff]  ;;  %v291_v22 = vld [vmem:[%s5680_s3 + $0x8] sm:$0xff]  ;;  %v128_v23 = vadd.f32 %v3330_v11, %v89_v8  ;;  %v293_v27 = vld [vmem:[%s5680_s3 + $0x18] sm:$0xff] }
  0x1b   :  { %v193_v24 = vld [vmem:[%s5679_s2 + $0x8] sm:$0xff]  ;;  %v4820_v25 = vpack.c.bf16 %v291_v22, %v290_v21  ;;  %v3349_v29 = vld [vmem:[%s5677_s0 + $0x250] sm:$0xff] }
  0x1c   :  { %v3348_v28 = vld [vmem:[%s5677_s0 + $0x248] sm:$0xff] }
  0x1d   :  { %4122 = vmatpush1.bf16.msra.mxu0 %v4121_v6 }
  0x1e   :  { %4123 = vmatprep.subr.bf16.mxu0 %v4525_v3 }
  0x1f   :  { %14 = vsyncpa [#allocation3], 0  ;;  %4137 = vmatpush3.bf16.msra.mxu1 %v4820_v25  ;;  %v4836_v30 = vpack.c.bf16 %v293_v27, %v292_v26  ;;  %v4127_v31 = vpack.c.bf16 %v182_v16, %v181_v13  ;;  %v90_v32 = vadd.f32 %v3312_v20, %v51_v14  ;;  %201 = vperm.xlu0 %4500, %v193_v24   ;;  %vm4527_vm2 = vmmov 1   ;;  %v3331_v38 = vld [vmem:[%s5677_s0 + $0x1c0] sm:$0x3f]  ;;  %v191_v49 = vld [vmem:[%s5678_s1 + $0x18] sm:$0xff] }
  0x20   :  { %4138 = vmatprep.subr.bf16.mxu1 %v4525_v3  ;;  %vm4840_vm3 = vmpackc.low %vm373_vm1, %vm4527_vm2  ;;  %v183_v34 = vmul.f32 0.25, %v164_v17  ;;  %v184_v35 = vmul.f32 0.25, %v165_v18  ;;  %v166_v36 = vadd.f32 %v3348_v28, %v127_v19  ;;  %v167_v37 = vadd.f32 %v3349_v29, %v128_v23  ;;  %v3350_v43 = vld [vmem:[%s5677_s0 + $0x258] sm:$0x3f]  ;;  %v188_v48 = vld [vmem:[%s5678_s1] sm:$0xff]  ;;  %s4530_s22 = smov 103  }
  0x21   :  { %4125 = vmatpush1.bf16.msra.mxu0 %v4124_v12  ;;  %v129_v42 = vadd.f32 %v3331_v38, %v90_v32  ;;  %v4528_v47 = vmov 0.0   ;;  %vm211_vm4 = vcmask 1045504   ;;  %v190_v50 = vld [vmem:[%s5678_s1 + $0x10] sm:$0xff]  ;;  %vm4529_vm5 = vmmov 0   ;;  %v294_v51 = vld [vmem:[%s5680_s3 + $0x20] sm:$0xff]  ;;  %v295_v52 = vld [vmem:[%s5680_s3 + $0x28] sm:$0xff] }
  0x22   :  { %4126 = vmatprep.subr.bf16.mxu0 %v4525_v3  ;;  %v4130_v39 = vpack.c.bf16 %v184_v35, %v183_v34  ;;  %v185_v40 = vmul.f32 0.25, %v166_v36  ;;  %v186_v41 = vmul.f32 0.25, %v167_v37  ;;  %3648 = vmatprep.mubr.msk.f32.mxu1 %vm4529_vm5, %v4528_v47  ;;  %v453_v53 = vrot.slane %v293_v27, 1  ;;  %v296_v56 = vld [vmem:[%s5680_s3 + $0x30] sm:$0xff]  ;;  %v297_v60 = vld [vmem:[%s5680_s3 + $0x38] sm:$0xff]  ;;  %v298_v61 = vld [vmem:[%s5680_s3 + $0x40] sm:$0xff] }
  0x23   :  { %4141 = vmatpush3.bf16.msk.msra.mxu1 %vm4840_vm3, %v4836_v30  ;;  %v168_v45 = vadd.f32 %v3350_v43, %v129_v42  ;;  %v454_v54 = vrot.slane %v294_v51, 1  ;;  %v456_v55 = vrot.slane %v295_v52, 1  ;;  %vm452_vm6 = vcmask 1046528   ;;  %v299_v8 = vld [vmem:[%s5680_s3 + $0x48] sm:$0xff]  ;;  %v300_v17 = vld [vmem:[%s5680_s3 + $0x50] sm:$0xff]  ;;  %v301_v18 = vld [vmem:[%s5680_s3 + $0x58] sm:$0xff] }
  0x24   :  { %4142 = vmatprep.subr.bf16.mxu1 %v4525_v3  ;;  %v4133_v44 = vpack.c.bf16 %v186_v41, %v185_v40  ;;  %v458_v57 = vrot.slane %v296_v56, 1  ;;  %vm369_vm7 = vcmask 203776   ;;  %v542_v5 = vrot.slane %v296_v56, 2  ;;  %v302_v27 = vld [vmem:[%s5680_s3 + $0x60] sm:$0xff]  ;;  %v303_v37 = vld [vmem:[%s5680_s3 + $0x68] sm:$0xff]  ;;  %v304_v38 = vld [vmem:[%s5680_s3 + $0x70] sm:$0xff] }
  0x25   :  { %4128 = vmatpush1.bf16.msra.mxu0 %v4127_v31  ;;  %v187_v46 = vmul.f32 0.25, %v168_v45  ;;  %v455_v58 = vsel %vm452_vm6, %v453_v53, %v454_v54  ;;  %v457_v59 = vsel %vm452_vm6, %v454_v54, %v456_v55  ;;  %v543_v6 = vrot.slane %v297_v60, 2  ;;  %v340_v54 = vld [vmem:[%s5682_s5] sm:$0xff]  ;;  %v342_v60 = vld [vmem:[%s5682_s5 + $0x10] sm:$0xff]  ;;  %s4531_s13 = smov [#allocation2]  }
  0x26   :  { %4129 = vmatprep.subr.bf16.mxu0 %v4525_v3  ;;  %v4891_v0 = vpack.c.bf16 %v457_v59, %v455_v58  ;;  %v459_v1 = vsel %vm452_vm6, %v456_v55, %v458_v57  ;;  %v545_v7 = vrot.slane %v298_v61, 2  ;;  %v547_v12 = vrot.slane %v299_v8, 2  ;;  %v341_v55 = vld [vmem:[%s5682_s5 + $0x8] sm:$0xff]  ;;  %v306_v56 = vld [vmem:[%s5680_s3 + $0x80] sm:$0xff]  ;;  %v343_v61 = vld [vmem:[%s5682_s5 + $0x18] sm:$0xff]  ;;  %s3286_s14 = sshll.u32 %s4531_s13, 4  ;;  %s3287_s14 = int_to_ptr.vmem [resolvable:$true] %s3286_s14 }
  0x27   :  { %v4905_v11 = vpack.c.bf16 %v458_v57, %v459_v1  ;;  %v544_v14 = vsel %vm211_vm4, %v542_v5, %v543_v6  ;;  %v632_v23 = vrot.slane %v299_v8, 3  ;;  %v633_v24 = vrot.slane %v300_v17, 3  ;;  %v307_v57 = vld [vmem:[%s5680_s3 + $0x88] sm:$0xff]  ;;  %s4501_s1 = scalar_lea.vmem %s3287_s14, 32  ;;  %p4506_p1 = scmp.lt.s32.totalorder %s3287_s14, %s3287_s14 }
  0x28   :  { %v546_v15 = vsel %vm211_vm4, %v543_v6, %v545_v7  ;;  %v548_v21 = vsel %vm211_vm4, %v545_v7, %v547_v12  ;;  %v635_v26 = vrot.slane %v301_v18, 3  ;;  %vm631_vm8 = vcmask 1044480   ;;  %v308_v7 = vld [vmem:[%s5680_s3 + $0x90] sm:$0xff]  ;;  %v309_v18 = vld [vmem:[%s5680_s3 + $0x98] sm:$0xff]  ;;  %p4502_p0 = scmp.ne.s32.totalorder %s3287_s14, %s4501_s1  ;;  %p4507_p2 = scmp.lt.s32.totalorder %s4501_s1, %s4501_s1 }
  0x29   :  { %4131 = vmatpush1.bf16.msra.mxu0 %v4130_v39  ;;  %v4925_v20 = vpack.c.bf16 %v546_v15, %v544_v14  ;;  %v4942_v29 = vpack.c.bf16 %v547_v12, %v548_v21  ;;  %v637_v31 = vrot.slane %v302_v27, 3  ;;  %v634_v34 = vsel %vm631_vm8, %v632_v23, %v633_v24  ;;  %v345_v12 = vld [vmem:[%s5682_s5 + $0x28] sm:$0xff]  ;;  %v310_v21 = vld [vmem:[%s5680_s3 + $0xa0] sm:$0xff]  ;;  %v346_v23 = vld [vmem:[%s5682_s5 + $0x30] sm:$0xff] }
  0x2a   :  { %4132 = vmatprep.subr.bf16.mxu0 %v4525_v3  ;;  %v636_v35 = vsel %vm631_vm8, %v633_v24, %v635_v26  ;;  %v722_v43 = vrot.slane %v302_v27, 4  ;;  %v725_v45 = vrot.slane %v304_v38, 4  ;;  %vm721_vm9 = vcmask 1043456   ;;  %v347_v24 = vld [vmem:[%s5682_s5 + $0x38] sm:$0xff]  ;;  %p4508_p3 = por %p4507_p2, %p4506_p1 }
  0x2b   :  { %v4967_v40 = vpack.c.bf16 %v636_v35, %v634_v34  ;;  %v638_v41 = vsel %vm631_vm8, %v635_v26, %v637_v31  ;;  %v5006_v58 = vpack.c.bf16 %v341_v55, %v340_v54  ;;  %v813_v5 = vrot.slane %v306_v56, 5  ;;  %v350_v54 = vld [vmem:[%s5682_s5 + $0x50] sm:$0xff]  ;;  %v351_v55 = vld [vmem:[%s5682_s5 + $0x58] sm:$0xff] }
  0x2c   :  { %v815_v6 = vrot.slane %v307_v57, 5  ;;  %vm811_vm10 = vcmask 1042432   ;;  %v5034_v8 = vpack.c.bf16 %v343_v61, %v342_v60  ;;  %v817_v14 = vrot.slane %v308_v7, 5  ;;  %p4509_p4 = pnand %p4508_p3, %p4502_p0 }
  0x2d   :  { %4134 = vmatpush1.bf16.msra.mxu0 %v4133_v44  ;;  %v723_v44 = vrot.slane %v303_v37, 4  ;;  %v902_v34 = vrot.slane %v308_v7, 6  ;;  %v903_v35 = vrot.slane %v309_v18, 6  ;;  %vm901_vm11 = vcmask 1041408   ;;  %v311_v37 = vld [vmem:[%s5680_s3 + $0xa8] sm:$0xff] }
  0x2e   :  { %251 = vmatprep.subr.mxu0 %v4528_v47  ;;  %v816_v17 = vsel %vm811_vm10, %v813_v5, %v815_v6  ;;  %v818_v27 = vsel %vm811_vm10, %v815_v6, %v817_v14  ;;  %v5092_v38 = vpack.c.bf16 %v347_v24, %v346_v23  ;;  %v991_v60 = vrot.slane %v311_v37, 7  ;;  %v352_v6 = vld [vmem:[%s5682_s5 + $0x60] sm:$0xff]  ;;  %v353_v7 = vld [vmem:[%s5682_s5 + $0x68] sm:$0xff]  ;;  %v316_v24 = vld [vmem:[%s5680_s3 + $0xd0] sm:$0xff] }
  0x2f   :  { %v724_v52 = vsel %vm721_vm9, %v722_v43, %v723_v44  ;;  %v726_v53 = vsel %vm721_vm9, %v723_v44, %v725_v45  ;;  %v349_v43 = vld [vmem:[%s5682_s5 + $0x48] sm:$0xff]  ;;  %v5107_v44 = vpack.c.bf16 %v817_v14, %v818_v27  ;;  %vm1777_vm12 = vcmask 982016  }
  0x30   :  { %v315_v23 = vld [vmem:[%s5680_s3 + $0xc8] sm:$0xff]  ;;  %vm1852_vm13 = vcmask 687104   ;;  %vm1929_vm14 = vcmask 73728  }
  0x31   :  { %3351 = vmatpush1.msk.msra.mxu0 %vm211_vm4, %v187_v46  ;;  %v305_v46 = vld [vmem:[%s5680_s3 + $0x78] sm:$0xff]  ;;  %v319_v27 = vld [vmem:[%s5680_s3 + $0xe8] sm:$0xff] }
  0x32   :  { %280 = vmatmul.mubr.f32.vlgmr.msra.gmra.mrb[0].mxu0 %v188_v48  ;;  %4247 = vmatprep.subr.bf16.mxu0 %v4525_v3 }
  0x33   :  { %3353 = vmatprep.mubr.msk.f32.mxu0 %vm204_vm0, %v191_v49  ;;  %v4983_v49 = vpack.c.bf16 %v637_v31, %v638_v41  ;;  %4249 = vmatpush3.bf16.msra.mxu0 %v5006_v58  ;;  %v348_v41 = vld [vmem:[%s5682_s5 + $0x40] sm:$0xff] }
  0x34   :  { %4250 = vmatprep.subr.bf16.mxu0 %v4525_v3 }
  0x36   :  { %285 = vmatmul.mubr.f32.gmra.mrb[2].mxu0 %v190_v50  ;;  %v727_v50 = vrot.slane %v305_v46, 4 }
  0x37   :  { %3846 = vmatprep.mubr.msk.f32.mxu0 %vm4529_vm5, %v4528_v47  ;;  %4252 = vmatpush3.bf16.msra.mxu0 %v5034_v8 }
  0x38   :  { %4253 = vmatprep.subr.bf16.mxu0 %v4525_v3 }
  0x99   :  { %v197_v62 = vpop.permute.xlu0 %196 }
  0x9e   :  { %v202_v36 = vpop.permute.xlu0 %201 }
 0x105   :  { %v281_v63 = vpop.f32.mrb[0].mxu0 }
 0x106   :  { %v4894_v2 = vadd.f32 %v281_v63, %v197_v62  ;;  %v283_v4 = vpop.f32.mrb[1].mxu0  ;;  %v5021_v62 = vpack.c.bf16 %v726_v53, %v724_v52  ;;  %v728_v63 = vsel %vm721_vm9, %v725_v45, %v727_v50  ;;  %v904_v45 = vsel %vm901_vm11, %v902_v34, %v903_v35  ;;  %v313_v52 = vld [vmem:[%s5680_s3 + $0xb8] sm:$0xff]  ;;  %v320_v34 = vld [vmem:[%s5680_s3 + $0xf0] sm:$0xff] }
 0x107   :  { %v812_v4 = vrot.slane %v305_v46, 5  ;;  %v907_v46 = vrot.slane %v311_v37, 6  ;;  %v5122_v53 = vpack.c.bf16 %v349_v43, %v348_v41  ;;  %v1158_v41 = vrot.slane %v319_v27, 1 }
 0x108   :  { %1931 = vrot.lane.b32.xlu1 %v4894_v2, %s4530_s22  ;;  %3649 = vmatmul.mubr.msk.f32.vlgmr.msra.gmra.mrb[0].mxu1 %vm369_vm7, %v4894_v2  ;;  %v538_v9 = vrot.slane %v4894_v2, 2  ;;  %v448_v13 = vrot.slane %v4894_v2, 1  ;;  %v717_v19 = vrot.slane %v4894_v2, 4  ;;  %v627_v22 = vrot.slane %v4894_v2, 3 }
 0x109   :  { %v286_v10 = vpop.f32.mrb[2].mxu0  ;;  %4144 = vmatpush3.bf16.msra.mxu1 %v4891_v0  ;;  %3659 = vmatprep.mubr.msk.f32.mxu1 %vm4529_vm5, %v4528_v47  ;;  %v897_v28 = vrot.slane %v4894_v2, 6  ;;  %v807_v32 = vrot.slane %v4894_v2, 5  ;;  %v987_v42 = vrot.slane %v4894_v2, 7  ;;  %v1160_v43 = vrot.slane %v320_v34, 1  ;;  %v322_v2 = vld [vmem:[%s5680_s3 + $0x100] sm:$0xff] }
 0x10a   :  { %2081 = vrot.lane.b32.xlu0 %v538_v9, %s4530_s22  ;;  %4145 = vmatprep.subr.bf16.mxu1 %v4525_v3  ;;  %v288_v16 = vpop.f32.mrb[3].mxu0  ;;  %v4959_v39 = vadd.f32 %v286_v10, %v202_v36  ;;  %v344_v10 = vld [vmem:[%s5682_s5 + $0x20] sm:$0xff]  ;;  %v905_v36 = vrot.slane %v310_v21, 6  ;;  %v327_v34 = vld [vmem:[%s5680_s3 + $0x128] sm:$0xff] }
 0x10b   :  { %v814_v16 = vsel %vm811_vm10, %v812_v4, %v813_v5  ;;  %v314_v4 = vld [vmem:[%s5680_s3 + $0xc0] sm:$0xff]  ;;  %v5142_v5 = vpack.c.bf16 %v351_v55, %v350_v54 }
 0x10c   :  { %2006 = vrot.lane.b32.xlu1 %v448_v13, %s4530_s22  ;;  %v1242_v48 = vrot.slane %v4959_v39, 2  ;;  %v1153_v51 = vrot.slane %v4959_v39, 1  ;;  %v1420_v59 = vrot.slane %v4959_v39, 4  ;;  %v1331_v1 = vrot.slane %v4959_v39, 3 }
 0x10d   :  { %4148 = vmatpush3.bf16.msk.msra.mxu1 %vm4840_vm3, %v4905_v11  ;;  %v1509_v15 = vrot.slane %v4959_v39, 5  ;;  %v5083_v26 = vpack.c.bf16 %v816_v17, %v814_v16  ;;  %v1687_v31 = vrot.slane %v4959_v39, 7  ;;  %v908_v57 = vsel %vm901_vm11, %v905_v36, %v907_v46 }
 0x10e   :  { %2231 = vrot.lane.b32.xlu0 %v717_v19, %s4530_s22  ;;  %4149 = vmatprep.subr.bf16.mxu1 %v4525_v3  ;;  %v996_v14 = vrot.slane %v314_v4, 7  ;;  %v5163_v16 = vpack.c.bf16 %v353_v7, %v352_v6 }
 0x110   :  { %2156 = vrot.lane.b32.xlu1 %v627_v22, %s4530_s22  ;;  %3660 = vmatmul.mubr.msk.f32.vlgmr.msra.gmra.mrb[0].mxu1 %vm369_vm7, %v448_v13  ;;  %v5050_v13 = vpack.c.bf16 %v727_v50, %v728_v63  ;;  %v312_v50 = vld [vmem:[%s5680_s3 + $0xb0] sm:$0xff]  ;;  %v994_v63 = vrot.slane %v313_v52, 7 }
 0x111   :  { %4151 = vmatpush3.bf16.msra.mxu1 %v4925_v20  ;;  %3670 = vmatprep.mubr.msk.f32.mxu1 %vm4529_vm5, %v4528_v47  ;;  %v992_v61 = vrot.slane %v312_v50, 7  ;;  %v1161_v50 = vsel %vm452_vm6, %v1158_v41, %v1160_v43 }
 0x112   :  { %2381 = vrot.lane.b32.xlu0 %v897_v28, %s4530_s22  ;;  %4152 = vmatprep.subr.bf16.mxu1 %v4525_v3  ;;  %v997_v18 = vsel %vm373_vm1, %v994_v63, %v996_v14 }
 0x113   :  { %v5179_v21 = vpack.c.bf16 %v996_v14, %v997_v18  ;;  %v326_v14 = vld [vmem:[%s5680_s3 + $0x120] sm:$0xff] }
 0x114   :  { %2306 = vrot.lane.b32.xlu1 %v807_v32, %s4530_s22  ;;  %v1338_v27 = vrot.slane %v326_v14, 3 }
 0x115   :  { %4155 = vmatpush3.bf16.msk.msra.mxu1 %vm4840_vm3, %v4942_v29 }
 0x116   :  { %2531 = vrot.lane.b32.xlu0 %v4959_v39, %s4530_s22  ;;  %4156 = vmatprep.subr.bf16.mxu1 %v4525_v3 }
 0x118   :  { %2456 = vrot.lane.b32.xlu1 %v987_v42, %s4530_s22  ;;  %3671 = vmatmul.mubr.msk.f32.vlgmr.msra.gmra.mrb[0].mxu1 %vm369_vm7, %v538_v9  ;;  %v1598_v9 = vrot.slane %v4959_v39, 6 }
 0x119   :  { %4158 = vmatpush3.bf16.msra.mxu1 %v4967_v40  ;;  %3681 = vmatprep.mubr.msk.f32.mxu1 %vm4529_vm5, %v4528_v47 }
 0x11a   :  { %2681 = vrot.lane.b32.xlu0 %v1242_v48, %s4530_s22  ;;  %4159 = vmatprep.subr.bf16.mxu1 %v4525_v3 }
 0x11c   :  { %2606 = vrot.lane.b32.xlu1 %v1153_v51, %s4530_s22 }
 0x11d   :  { %4162 = vmatpush3.bf16.msk.msra.mxu1 %vm4840_vm3, %v4983_v49 }
 0x11e   :  { %2831 = vrot.lane.b32.xlu0 %v1420_v59, %s4530_s22  ;;  %4163 = vmatprep.subr.bf16.mxu1 %v4525_v3 }
 0x120   :  { %2756 = vrot.lane.b32.xlu1 %v1331_v1, %s4530_s22  ;;  %3682 = vmatmul.mubr.msk.f32.vlgmr.msra.gmra.mrb[0].mxu1 %vm369_vm7, %v627_v22  ;;  %v5068_v22 = vpack.c.bf16 %v345_v12, %v344_v10  ;;  %v5155_v10 = vpack.c.bf16 %v907_v46, %v908_v57  ;;  %v995_v12 = vsel %vm373_vm1, %v992_v61, %v994_v63  ;;  %v324_v63 = vld [vmem:[%s5680_s3 + $0x110] sm:$0xff] }
 0x121   :  { %4165 = vmatpush3.bf16.msra.mxu1 %v5021_v62  ;;  %3692 = vmatprep.mubr.msk.f32.mxu1 %vm4529_vm5, %v4528_v47 }
 0x122   :  { %2981 = vrot.lane.b32.xlu0 %v1598_v9, %s4530_s22  ;;  %4166 = vmatprep.subr.bf16.mxu1 %v4525_v3 }
 0x123   :  { %4255 = vmatpush3.bf16.msra.mxu0 %v5068_v22 }
 0x124   :  { %2906 = vrot.lane.b32.xlu1 %v1509_v15, %s4530_s22  ;;  %4256 = vmatprep.subr.bf16.mxu0 %v4525_v3 }
 0x125   :  { %4169 = vmatpush3.bf16.msk.msra.mxu1 %vm4840_vm3, %v5050_v13 }
 0x126   :  { %4170 = vmatprep.subr.bf16.mxu1 %v4525_v3 }
 0x127   :  { %4258 = vmatpush3.bf16.msra.mxu0 %v5092_v38 }
 0x128   :  { %3056 = vrot.lane.b32.xlu1 %v1687_v31, %s4530_s22  ;;  %3693 = vmatmul.mubr.msk.f32.vlgmr.msra.gmra.mrb[0].mxu1 %vm369_vm7, %v717_v19  ;;  %v906_v19 = vsel %vm901_vm11, %v903_v35, %v905_v36  ;;  %v5202_v35 = vpack.c.bf16 %v316_v24, %v315_v23  ;;  %v317_v36 = vld [vmem:[%s5680_s3 + $0xd8] sm:$0xff]  ;;  %v1335_v24 = vrot.slane %v324_v63, 3 }
 0x129   :  { %4172 = vmatpush3.bf16.msra.mxu1 %v5083_v26  ;;  %3703 = vmatprep.mubr.msk.f32.mxu1 %vm4529_vm5, %v4528_v47  ;;  %v5134_v56 = vpack.c.bf16 %v906_v19, %v904_v45  ;;  %v321_v45 = vld [vmem:[%s5680_s3 + $0xf8] sm:$0xff] }
 0x12a   :  { %4173 = vmatprep.subr.bf16.mxu1 %v4525_v3  ;;  %4259 = vmatprep.subr.bf16.mxu0 %v4525_v3  ;;  %v1162_v52 = vrot.slane %v321_v45, 1  ;;  %v1246_v57 = vrot.slane %v321_v45, 2  ;;  %v328_v45 = vld [vmem:[%s5680_s3 + $0x130] sm:$0xff] }
 0x12b   :  { %4261 = vmatpush3.bf16.msra.mxu0 %v5122_v53 }
 0x12c   :  { %4262 = vmatprep.subr.bf16.mxu0 %v4525_v3  ;;  %v1163_v55 = vsel %vm452_vm6, %v1160_v43, %v1162_v52  ;;  %v1340_v43 = vrot.slane %v327_v34, 3 }
 0x12d   :  { %4176 = vmatpush3.bf16.msk.msra.mxu1 %vm4840_vm3, %v5107_v44  ;;  %v5241_v4 = vpack.c.bf16 %v1162_v52, %v1163_v55  ;;  %v1424_v52 = vrot.slane %v327_v34, 4  ;;  %v330_v55 = vld [vmem:[%s5680_s3 + $0x140] sm:$0xff] }
 0x12e   :  { %4177 = vmatprep.subr.bf16.mxu1 %v4525_v3 }
 0x12f   :  { %4264 = vmatpush3.bf16.msra.mxu0 %v5142_v5 }
 0x130   :  { %3704 = vmatmul.mubr.msk.f32.vlgmr.msra.gmra.mrb[0].mxu1 %vm369_vm7, %v807_v32  ;;  %v993_v32 = vsel %vm373_vm1, %v991_v60, %v992_v61  ;;  %4265 = vmatprep.subr.bf16.mxu0 %v4525_v3  ;;  %v1247_v60 = vrot.slane %v322_v2, 2  ;;  %v1425_v2 = vrot.slane %v328_v45, 4 }
 0x131   :  { %4179 = vmatpush3.bf16.msra.mxu1 %v5134_v56  ;;  %3714 = vmatprep.mubr.msk.f32.mxu1 %vm4529_vm5, %v4528_v47  ;;  %v5169_v17 = vpack.c.bf16 %v995_v12, %v993_v32  ;;  %v1251_v32 = vrot.slane %v324_v63, 2  ;;  %v325_v12 = vld [vmem:[%s5680_s3 + $0x118] sm:$0xff]  ;;  %v1429_v63 = vrot.slane %v330_v55, 4 }
 0x132   :  { %4180 = vmatprep.subr.bf16.mxu1 %v4525_v3  ;;  %v1248_v6 = vsel %vm211_vm4, %v1246_v57, %v1247_v60 }
 0x133   :  { %4267 = vmatpush3.bf16.msra.mxu0 %v5163_v16 }
 0x134   :  { %3844 = vmatprep.subr.mxu0 %v4528_v47 }
 0x135   :  { %4183 = vmatpush3.bf16.msk.msra.mxu1 %vm4840_vm3, %v5155_v10 }
 0x136   :  { %4184 = vmatprep.subr.bf16.mxu1 %v4525_v3 }
 0x138   :  { %3715 = vmatmul.mubr.msk.f32.vlgmr.msra.gmra.mrb[0].mxu1 %vm369_vm7, %v897_v28  ;;  %v318_v28 = vld [vmem:[%s5680_s3 + $0xe0] sm:$0xff] }
 0x139   :  { %4186 = vmatpush3.bf16.msra.mxu1 %v5169_v17  ;;  %3725 = vmatprep.mubr.msk.f32.mxu1 %vm4529_vm5, %v4528_v47  ;;  %v1157_v37 = vrot.slane %v318_v28, 1  ;;  %v5215_v19 = vpack.c.bf16 %v318_v28, %v317_v36  ;;  %v1336_v28 = vrot.slane %v325_v12, 3  ;;  %v1513_v12 = vrot.slane %v330_v55, 5 }
 0x13a   :  { %4187 = vmatprep.subr.bf16.mxu1 %v4525_v3 }
 0x13b   :  { %v1159_v46 = vsel %vm452_vm6, %v1157_v37, %v1158_v41  ;;  %v1337_v37 = vsel %vm631_vm8, %v1335_v24, %v1336_v28  ;;  %v1339_v41 = vsel %vm631_vm8, %v1336_v28, %v1338_v27  ;;  %v333_v24 = vld [vmem:[%s5680_s3 + $0x158] sm:$0xff] }
 0x13c   :  { %v5231_v54 = vpack.c.bf16 %v1161_v50, %v1159_v46  ;;  %v5284_v46 = vpack.c.bf16 %v1339_v41, %v1337_v37  ;;  %v1341_v50 = vsel %vm631_vm8, %v1338_v27, %v1340_v43  ;;  %v1518_v37 = vrot.slane %v333_v24, 5  ;;  %v334_v41 = vld [vmem:[%s5680_s3 + $0x160] sm:$0xff] }
 0x13d   :  { %4190 = vmatpush3.bf16.msk.msra.mxu1 %vm4840_vm3, %v5179_v21  ;;  %v5295_v57 = vpack.c.bf16 %v1340_v43, %v1341_v50  ;;  %v1603_v50 = vrot.slane %v334_v41, 6 }
 0x13e   :  { %4191 = vmatprep.subr.bf16.mxu1 %v4525_v3 }
 0x140   :  { %3726 = vmatmul.mubr.msk.f32.vlgmr.msra.gmra.mrb[0].mxu1 %vm369_vm7, %v987_v42  ;;  %v323_v42 = vld [vmem:[%s5680_s3 + $0x108] sm:$0xff] }
 0x141   :  { %4193 = vmatpush3.bf16.msra.mxu1 %v5202_v35  ;;  %3736 = vmatprep.mubr.msk.f32.mxu1 %vm4529_vm5, %v4528_v47  ;;  %v1249_v61 = vrot.slane %v323_v42, 2 }
 0x142   :  { %4194 = vmatprep.subr.bf16.mxu1 %v4525_v3 }
 0x143   :  { %v1250_v7 = vsel %vm211_vm4, %v1247_v60, %v1249_v61  ;;  %v1252_v23 = vsel %vm211_vm4, %v1249_v61, %v1251_v32  ;;  %v1426_v60 = vsel %vm721_vm9, %v1424_v52, %v1425_v2 }
 0x144   :  { %v5257_v18 = vpack.c.bf16 %v1250_v7, %v1248_v6  ;;  %v5268_v36 = vpack.c.bf16 %v1251_v32, %v1252_v23  ;;  %v331_v6 = vld [vmem:[%s5680_s3 + $0x148] sm:$0xff] }
 0x145   :  { %4197 = vmatpush3.bf16.msk.msra.mxu1 %vm4840_vm3, %v5215_v19  ;;  %v1514_v14 = vrot.slane %v331_v6, 5 }
 0x146   :  { %4198 = vmatprep.subr.bf16.mxu1 %v4525_v3 }
 0x147   :  { %v1515_v27 = vsel %vm811_vm10, %v1513_v12, %v1514_v14 }
 0x148   :  { %3737 = vmatmul.mubr.msk.f32.vlgmr.msra.gmra.mrb[0].mxu1 %vm369_vm7, %v4959_v39 }
 0x149   :  { %4200 = vmatpush3.bf16.msra.mxu1 %v5231_v54  ;;  %3747 = vmatprep.mubr.msk.f32.mxu1 %vm4529_vm5, %v4528_v47 }
 0x14a   :  { %4201 = vmatprep.subr.bf16.mxu1 %v4525_v3 }
 0x14d   :  { %4204 = vmatpush3.bf16.msk.msra.mxu1 %vm4840_vm3, %v5241_v4 }
 0x14e   :  { %4205 = vmatprep.subr.bf16.mxu1 %v4525_v3 }
 0x150   :  { %3748 = vmatmul.mubr.msk.f32.vlgmr.msra.gmra.mrb[0].mxu1 %vm369_vm7, %v1153_v51  ;;  %v329_v51 = vld [vmem:[%s5680_s3 + $0x138] sm:$0xff] }
 0x151   :  { %4207 = vmatpush3.bf16.msra.mxu1 %v5257_v18  ;;  %3758 = vmatprep.mubr.msk.f32.mxu1 %vm4529_vm5, %v4528_v47  ;;  %v1427_v42 = vrot.slane %v329_v51, 4  ;;  %v1602_v51 = vrot.slane %v333_v24, 6 }
 0x152   :  { %4208 = vmatprep.subr.bf16.mxu1 %v4525_v3 }
 0x153   :  { %v1428_v61 = vsel %vm721_vm9, %v1425_v2, %v1427_v42  ;;  %v1430_v32 = vsel %vm721_vm9, %v1427_v42, %v1429_v63  ;;  %v336_v2 = vld [vmem:[%s5680_s3 + $0x170] sm:$0xff]  ;;  %v1604_v55 = vsel %vm901_vm11, %v1602_v51, %v1603_v50 }
 0x154   :  { %v5311_v7 = vpack.c.bf16 %v1428_v61, %v1426_v60  ;;  %v5322_v28 = vpack.c.bf16 %v1429_v63, %v1430_v32  ;;  %v1607_v61 = vrot.slane %v336_v2, 6  ;;  %v337_v63 = vld [vmem:[%s5680_s3 + $0x178] sm:$0xff]  ;;  %v1691_v32 = vrot.slane %v336_v2, 7  ;;  %v356_v2 = vld [vmem:[%s5684_s7 + $0x8] sm:$0xff] }
 0x155   :  { %4211 = vmatpush3.bf16.msk.msra.mxu1 %vm4840_vm3, %v5268_v36  ;;  %v1692_v12 = vrot.slane %v337_v63, 7 }
 0x156   :  { %4212 = vmatprep.subr.bf16.mxu1 %v4525_v3 }
 0x158   :  { %3759 = vmatmul.mubr.msk.f32.vlgmr.msra.gmra.mrb[0].mxu1 %vm369_vm7, %v1242_v48  ;;  %v332_v48 = vld [vmem:[%s5680_s3 + $0x150] sm:$0xff] }
 0x159   :  { %4214 = vmatpush3.bf16.msra.mxu1 %v5284_v46  ;;  %3769 = vmatprep.mubr.msk.f32.mxu1 %vm4529_vm5, %v4528_v47  ;;  %v1516_v23 = vrot.slane %v332_v48, 5 }
 0x15a   :  { %4215 = vmatprep.subr.bf16.mxu1 %v4525_v3 }
 0x15b   :  { %v1517_v34 = vsel %vm811_vm10, %v1514_v14, %v1516_v23  ;;  %v1519_v45 = vsel %vm811_vm10, %v1516_v23, %v1518_v37  ;;  %v339_v23 = vld [vmem:[%s5680_s3 + $0x188] sm:$0xff] }
 0x15c   :  { %v5338_v43 = vpack.c.bf16 %v1517_v34, %v1515_v27  ;;  %v5349_v42 = vpack.c.bf16 %v1518_v37, %v1519_v45  ;;  %v1693_v27 = vsel %vm373_vm1, %v1691_v32, %v1692_v12  ;;  %v1696_v37 = vrot.slane %v339_v23, 7  ;;  %v5418_v45 = vld [vmem:[%s5681_s4] sm:$0x1] }
 0x15d   :  { %4218 = vmatpush3.bf16.msk.msra.mxu1 %vm4840_vm3, %v5295_v57 }
 0x15e   :  { %4219 = vmatprep.subr.bf16.mxu1 %v4525_v3 }
 0x160   :  { %3770 = vmatmul.mubr.msk.f32.vlgmr.msra.gmra.mrb[0].mxu1 %vm369_vm7, %v1331_v1  ;;  %v335_v1 = vld [vmem:[%s5680_s3 + $0x168] sm:$0xff] }
 0x161   :  { %4221 = vmatpush3.bf16.msra.mxu1 %v5311_v7  ;;  %3780 = vmatprep.mubr.msk.f32.mxu1 %vm4529_vm5, %v4528_v47  ;;  %v1605_v52 = vrot.slane %v335_v1, 6 }
 0x162   :  { %4222 = vmatprep.subr.bf16.mxu1 %v4525_v3 }
 0x163   :  { %v1606_v60 = vsel %vm901_vm11, %v1603_v50, %v1605_v52  ;;  %v1608_v48 = vsel %vm901_vm11, %v1605_v52, %v1607_v61  ;;  %v355_v52 = vld [vmem:[%s5684_s7] sm:$0xff] }
 0x164   :  { %v5365_v6 = vpack.c.bf16 %v1606_v60, %v1604_v55  ;;  %v5376_v24 = vpack.c.bf16 %v1607_v61, %v1608_v48  ;;  %v357_v55 = vld [vmem:[%s5684_s7 + $0x10] sm:$0xff]  ;;  %v5434_v60 = vpack.c.bf16 %v356_v2, %v355_v52  ;;  %v358_v61 = vld [vmem:[%s5684_s7 + $0x18] sm:$0xff] }
 0x165   :  { %4225 = vmatpush3.bf16.msk.msra.mxu1 %vm4840_vm3, %v5322_v28  ;;  %v5441_v63 = vpack.c.bf16 %v358_v61, %v357_v55 }
 0x166   :  { %4226 = vmatprep.subr.bf16.mxu1 %v4525_v3 }
 0x168   :  { %3781 = vmatmul.mubr.msk.f32.vlgmr.msra.gmra.mrb[0].mxu1 %vm369_vm7, %v1420_v59  ;;  %v338_v59 = vld [vmem:[%s5680_s3 + $0x180] sm:$0xff] }
 0x169   :  { %4228 = vmatpush3.bf16.msra.mxu1 %v5338_v43  ;;  %3791 = vmatprep.mubr.msk.f32.mxu1 %vm4529_vm5, %v4528_v47  ;;  %v1694_v14 = vrot.slane %v338_v59, 7  ;;  %v360_v59 = vld [vmem:[%s5684_s7 + $0x28] sm:$0xff] }
 0x16a   :  { %4229 = vmatprep.subr.bf16.mxu1 %v4525_v3 }
 0x16b   :  { %v1695_v34 = vsel %vm373_vm1, %v1692_v12, %v1694_v14  ;;  %v361_v12 = vld [vmem:[%s5684_s7 + $0x30] sm:$0xff] }
 0x16c   :  { %v5386_v41 = vpack.c.bf16 %v1695_v34, %v1693_v27 }
 0x16d   :  { %4232 = vmatpush3.bf16.msk.msra.mxu1 %vm4840_vm3, %v5349_v42 }
 0x16e   :  { %4233 = vmatprep.subr.bf16.mxu1 %v4525_v3 }
 0x170   :  { %3792 = vmatmul.mubr.msk.f32.vlgmr.msra.gmra.mrb[0].mxu1 %vm369_vm7, %v1509_v15  ;;  %v1697_v15 = vsel %vm373_vm1, %v1694_v14, %v1696_v37  ;;  %v362_v14 = vld [vmem:[%s5684_s7 + $0x38] sm:$0xff] }
 0x171   :  { %4235 = vmatpush3.bf16.msra.mxu1 %v5365_v6  ;;  %3802 = vmatprep.mubr.msk.f32.mxu1 %vm4529_vm5, %v4528_v47  ;;  %v5394_v1 = vpack.c.bf16 %v1696_v37, %v1697_v15 }
 0x172   :  { %4236 = vmatprep.subr.bf16.mxu1 %v4525_v3 }
 0x175   :  { %4239 = vmatpush3.bf16.msk.msra.mxu1 %vm4840_vm3, %v5376_v24 }
 0x176   :  { %4240 = vmatprep.subr.bf16.mxu1 %v4525_v3 }
 0x178   :  { %3803 = vmatmul.mubr.msk.f32.vlgmr.msra.gmra.mrb[0].mxu1 %vm369_vm7, %v1598_v9  ;;  %v5411_v9 = vld [vmem:[%s5682_s5 + $0x70] sm:$0xff] }
 0x179   :  { %4242 = vmatpush3.bf16.msra.mxu1 %v5386_v41  ;;  %3813 = vmatprep.mubr.msk.f32.mxu1 %vm4529_vm5, %v4528_v47 }
 0x17a   :  { %4243 = vmatprep.subr.bf16.mxu1 %v4525_v3  ;;  %3845 = vmatpush3.msra.mxu0 %v5411_v9  ;;  %v1932_v48 = vpop.permute.xlu1 %1931 }
 0x17b   :  { %4283 = vmatprep.subr.bf16.mxu0 %v4525_v3 }
 0x17d   :  { %4246 = vmatpush3.bf16.msk.msra.mxu1 %vm4840_vm3, %v5394_v1 }
 0x17e   :  { %4268 = vmatprep.subr.bf16.mxu1 %v4525_v3  ;;  %v2007_v23 = vpop.permute.xlu1 %2006 }
 0x180   :  { %3814 = vmatmul.mubr.msk.f32.vlgmr.msra.gmra.mrb[0].mxu1 %vm369_vm7, %v1687_v31 }
 0x181   :  { %3871 = vmatprep.mubr.msk.f32.mxu1 %vm4529_vm5, %v4528_v47  ;;  %4270 = vmatpush3.bf16.msra.mxu1 %v5434_v60 }
 0x182   :  { %4271 = vmatprep.subr.bf16.mxu1 %v4525_v3 }
 0x185   :  { %4273 = vmatpush3.bf16.msra.mxu1 %v5441_v63 }
 0x186   :  { %4274 = vmatprep.subr.bf16.mxu1 %v4525_v3 }
 0x253   :  { %v1771_v39 = vpop.f32.mrb[0].mxu1 }
 0x254   :  { %v4431_v31 = vadd.f32 %v1771_v39, %v5418_v45  ;;  %v3815_v51 = vpop.f32.mrb[1].mxu1 }
 0x256   :  { %v1776_v50 = vmax.f32 %v4431_v31, 0.0 }
 0x258   :  { %3847 = vmatmul.mubr.msk.f32.vlgmr.msra.gmra.mrb[4].mxu0 %vm1777_vm12, %v1776_v50 }
 0x259   :  { %4285 = vmatpush3.bf16.msra.mxu0 %v4820_v25  ;;  %3882 = vmatprep.mubr.msk.f32.mxu0 %vm4529_vm5, %v4528_v47  ;;  %v359_v25 = vld [vmem:[%s5684_s7 + $0x20] sm:$0xff] }
 0x25a   :  { %4286 = vmatprep.subr.bf16.mxu0 %v4525_v3  ;;  %v5455_v32 = vpack.c.bf16 %v360_v59, %v359_v25 }
 0x25c   :  { %4276 = vmatpush3.bf16.msra.mxu1 %v5455_v32 }
 0x25d   :  { %4289 = vmatpush3.bf16.msk.msra.mxu0 %vm4840_vm3, %v4836_v30  ;;  %v5470_v30 = vpack.c.bf16 %v362_v14, %v361_v12  ;;  %4277 = vmatprep.subr.bf16.mxu1 %v4525_v3 }
 0x25e   :  { %4290 = vmatprep.subr.bf16.mxu0 %v4525_v3 }
 0x260   :  { %3883 = vmatmul.mubr.msk.f32.vlgmr.msra.gmra.mrb[6].mxu0 %vm369_vm7, %v1932_v48  ;;  %4279 = vmatpush3.bf16.msra.mxu1 %v5470_v30 }
 0x261   :  { %4292 = vmatpush3.bf16.msra.mxu0 %v4891_v0  ;;  %3893 = vmatprep.mubr.msk.f32.mxu0 %vm4529_vm5, %v4528_v47  ;;  %v2082_v0 = vpop.permute.xlu0 %2081 }
 0x262   :  { %4293 = vmatprep.subr.bf16.mxu0 %v4525_v3  ;;  %4280 = vmatprep.subr.bf16.mxu1 %v4525_v3 }
 0x265   :  { %4296 = vmatpush3.bf16.msk.msra.mxu0 %vm4840_vm3, %v4905_v11  ;;  %v2157_v11 = vpop.permute.xlu1 %2156 }
 0x266   :  { %4297 = vmatprep.subr.bf16.mxu0 %v4525_v3 }
 0x268   :  { %3894 = vmatmul.mubr.msk.f32.vlgmr.msra.gmra.mrb[6].mxu0 %vm369_vm7, %v2007_v23 }
 0x269   :  { %4299 = vmatpush3.bf16.msra.mxu0 %v4925_v20  ;;  %3904 = vmatprep.mubr.msk.f32.mxu0 %vm4529_vm5, %v4528_v47  ;;  %v2232_v20 = vpop.permute.xlu0 %2231 }
 0x26a   :  { %4300 = vmatprep.subr.bf16.mxu0 %v4525_v3 }
 0x26d   :  { %4303 = vmatpush3.bf16.msk.msra.mxu0 %vm4840_vm3, %v4942_v29  ;;  %v2307_v29 = vpop.permute.xlu1 %2306 }
 0x26e   :  { %4304 = vmatprep.subr.bf16.mxu0 %v4525_v3 }
 0x270   :  { %3905 = vmatmul.mubr.msk.f32.vlgmr.msra.gmra.mrb[6].mxu0 %vm369_vm7, %v2082_v0 }
 0x271   :  { %4306 = vmatpush3.bf16.msra.mxu0 %v4967_v40  ;;  %3915 = vmatprep.mubr.msk.f32.mxu0 %vm4529_vm5, %v4528_v47  ;;  %v2382_v40 = vpop.permute.xlu0 %2381 }
 0x272   :  { %4307 = vmatprep.subr.bf16.mxu0 %v4525_v3 }
 0x275   :  { %4310 = vmatpush3.bf16.msk.msra.mxu0 %vm4840_vm3, %v4983_v49  ;;  %v2457_v49 = vpop.permute.xlu1 %2456 }
 0x276   :  { %4311 = vmatprep.subr.bf16.mxu0 %v4525_v3 }
 0x278   :  { %3916 = vmatmul.mubr.msk.f32.vlgmr.msra.gmra.mrb[6].mxu0 %vm369_vm7, %v2157_v11 }
 0x279   :  { %4313 = vmatpush3.bf16.msra.mxu0 %v5021_v62  ;;  %3926 = vmatprep.mubr.msk.f32.mxu0 %vm4529_vm5, %v4528_v47  ;;  %v2532_v62 = vpop.permute.xlu0 %2531 }
 0x27a   :  { %4314 = vmatprep.subr.bf16.mxu0 %v4525_v3 }
 0x27d   :  { %4317 = vmatpush3.bf16.msk.msra.mxu0 %vm4840_vm3, %v5050_v13  ;;  %v2607_v13 = vpop.permute.xlu1 %2606 }
 0x27e   :  { %4318 = vmatprep.subr.bf16.mxu0 %v4525_v3 }
 0x280   :  { %3927 = vmatmul.mubr.msk.f32.vlgmr.msra.gmra.mrb[6].mxu0 %vm369_vm7, %v2232_v20 }
 0x281   :  { %4320 = vmatpush3.bf16.msra.mxu0 %v5083_v26  ;;  %3937 = vmatprep.mubr.msk.f32.mxu0 %vm4529_vm5, %v4528_v47  ;;  %v363_v26 = vld [vmem:[%s5684_s7 + $0x40] sm:$0xff] }
 0x282   :  { %4321 = vmatprep.subr.bf16.mxu0 %v4525_v3 }
 0x285   :  { %4324 = vmatpush3.bf16.msk.msra.mxu0 %vm4840_vm3, %v5107_v44  ;;  %v364_v44 = vld [vmem:[%s5684_s7 + $0x48] sm:$0xff] }
 0x286   :  { %4325 = vmatprep.subr.bf16.mxu0 %v4525_v3 }
 0x288   :  { %3938 = vmatmul.mubr.msk.f32.vlgmr.msra.gmra.mrb[6].mxu0 %vm369_vm7, %v2307_v29 }
 0x289   :  { %4327 = vmatpush3.bf16.msra.mxu0 %v5134_v56  ;;  %3948 = vmatprep.mubr.msk.f32.mxu0 %vm4529_vm5, %v4528_v47  ;;  %v5562_v56 = vpack.c.bf16 %v364_v44, %v363_v26 }
 0x28a   :  { %4328 = vmatprep.subr.bf16.mxu0 %v4525_v3 }
 0x28b   :  { %4282 = vmatpush3.bf16.msra.mxu1 %v5562_v56 }
 0x28c   :  { %3869 = vmatprep.subr.mxu1 %v4528_v47 }
 0x28d   :  { %4331 = vmatpush3.bf16.msk.msra.mxu0 %vm4840_vm3, %v5155_v10  ;;  %v5573_v10 = vld [vmem:[%s5684_s7 + $0x50] sm:$0xf] }
 0x28e   :  { %4332 = vmatprep.subr.bf16.mxu0 %v4525_v3 }
 0x28f   :  { %3870 = vmatpush3.msk.msra.mxu1 %vm721_vm9, %v5573_v10 }
 0x290   :  { %3949 = vmatmul.mubr.msk.f32.vlgmr.msra.gmra.mrb[6].mxu0 %vm369_vm7, %v2382_v40  ;;  %4395 = vmatprep.subr.bf16.mxu1 %v4525_v3 }
 0x291   :  { %4334 = vmatpush3.bf16.msra.mxu0 %v5169_v17  ;;  %3959 = vmatprep.mubr.msk.f32.mxu0 %vm4529_vm5, %v4528_v47  ;;  %v2682_v17 = vpop.permute.xlu0 %2681 }
 0x292   :  { %4335 = vmatprep.subr.bf16.mxu0 %v4525_v3 }
 0x295   :  { %4338 = vmatpush3.bf16.msk.msra.mxu0 %vm4840_vm3, %v5179_v21  ;;  %v2757_v21 = vpop.permute.xlu1 %2756 }
 0x296   :  { %4339 = vmatprep.subr.bf16.mxu0 %v4525_v3 }
 0x298   :  { %3960 = vmatmul.mubr.msk.f32.vlgmr.msra.gmra.mrb[6].mxu0 %vm369_vm7, %v2457_v49 }
 0x299   :  { %4341 = vmatpush3.bf16.msra.mxu0 %v5202_v35  ;;  %3970 = vmatprep.mubr.msk.f32.mxu0 %vm4529_vm5, %v4528_v47  ;;  %v2832_v35 = vpop.permute.xlu0 %2831 }
 0x29a   :  { %4342 = vmatprep.subr.bf16.mxu0 %v4525_v3 }
 0x29d   :  { %4345 = vmatpush3.bf16.msk.msra.mxu0 %vm4840_vm3, %v5215_v19  ;;  %v2907_v19 = vpop.permute.xlu1 %2906 }
 0x29e   :  { %4346 = vmatprep.subr.bf16.mxu0 %v4525_v3 }
 0x2a0   :  { %3971 = vmatmul.mubr.msk.f32.vlgmr.msra.gmra.mrb[6].mxu0 %vm369_vm7, %v2532_v62 }
 0x2a1   :  { %4348 = vmatpush3.bf16.msra.mxu0 %v5231_v54  ;;  %3981 = vmatprep.mubr.msk.f32.mxu0 %vm4529_vm5, %v4528_v47  ;;  %v2982_v54 = vpop.permute.xlu0 %2981 }
 0x2a2   :  { %4349 = vmatprep.subr.bf16.mxu0 %v4525_v3 }
 0x2a5   :  { %4352 = vmatpush3.bf16.msk.msra.mxu0 %vm4840_vm3, %v5241_v4  ;;  %v3057_v4 = vpop.permute.xlu1 %3056 }
 0x2a6   :  { %4353 = vmatprep.subr.bf16.mxu0 %v4525_v3 }
 0x2a8   :  { %3982 = vmatmul.mubr.msk.f32.vlgmr.msra.gmra.mrb[6].mxu0 %vm369_vm7, %v2607_v13 }
 0x2a9   :  { %4355 = vmatpush3.bf16.msra.mxu0 %v5257_v18  ;;  %3992 = vmatprep.mubr.msk.f32.mxu0 %vm4529_vm5, %v4528_v47  ;;  %v367_v18 = vld [vmem:[%s5683_s6] sm:$0x1] }
 0x2aa   :  { %4356 = vmatprep.subr.bf16.mxu0 %v4525_v3 }
 0x2ad   :  { %4359 = vmatpush3.bf16.msk.msra.mxu0 %vm4840_vm3, %v5268_v36 }
 0x2ae   :  { %4360 = vmatprep.subr.bf16.mxu0 %v4525_v3 }
 0x2b0   :  { %3993 = vmatmul.mubr.msk.f32.vlgmr.msra.gmra.mrb[6].mxu0 %vm369_vm7, %v2682_v17 }
 0x2b1   :  { %4362 = vmatpush3.bf16.msra.mxu0 %v5284_v46  ;;  %4003 = vmatprep.mubr.msk.f32.mxu0 %vm4529_vm5, %v4528_v47 }
 0x2b2   :  { %4363 = vmatprep.subr.bf16.mxu0 %v4525_v3 }
 0x2b5   :  { %4366 = vmatpush3.bf16.msk.msra.mxu0 %vm4840_vm3, %v5295_v57 }
 0x2b6   :  { %4367 = vmatprep.subr.bf16.mxu0 %v4525_v3 }
 0x2b8   :  { %4004 = vmatmul.mubr.msk.f32.vlgmr.msra.gmra.mrb[6].mxu0 %vm369_vm7, %v2757_v21 }
 0x2b9   :  { %4369 = vmatpush3.bf16.msra.mxu0 %v5311_v7  ;;  %4014 = vmatprep.mubr.msk.f32.mxu0 %vm4529_vm5, %v4528_v47 }
 0x2ba   :  { %4370 = vmatprep.subr.bf16.mxu0 %v4525_v3 }
 0x2bd   :  { %4373 = vmatpush3.bf16.msk.msra.mxu0 %vm4840_vm3, %v5322_v28 }
 0x2be   :  { %4374 = vmatprep.subr.bf16.mxu0 %v4525_v3 }
 0x2c0   :  { %4015 = vmatmul.mubr.msk.f32.vlgmr.msra.gmra.mrb[6].mxu0 %vm369_vm7, %v2832_v35 }
 0x2c1   :  { %4376 = vmatpush3.bf16.msra.mxu0 %v5338_v43  ;;  %4025 = vmatprep.mubr.msk.f32.mxu0 %vm4529_vm5, %v4528_v47 }
 0x2c2   :  { %4377 = vmatprep.subr.bf16.mxu0 %v4525_v3 }
 0x2c5   :  { %4380 = vmatpush3.bf16.msk.msra.mxu0 %vm4840_vm3, %v5349_v42 }
 0x2c6   :  { %4381 = vmatprep.subr.bf16.mxu0 %v4525_v3 }
 0x2c8   :  { %4026 = vmatmul.mubr.msk.f32.vlgmr.msra.gmra.mrb[6].mxu0 %vm369_vm7, %v2907_v19 }
 0x2c9   :  { %4383 = vmatpush3.bf16.msra.mxu0 %v5365_v6  ;;  %4036 = vmatprep.mubr.msk.f32.mxu0 %vm4529_vm5, %v4528_v47 }
 0x2ca   :  { %4384 = vmatprep.subr.bf16.mxu0 %v4525_v3 }
 0x2cd   :  { %4387 = vmatpush3.bf16.msk.msra.mxu0 %vm4840_vm3, %v5376_v24 }
 0x2ce   :  { %4388 = vmatprep.subr.bf16.mxu0 %v4525_v3 }
 0x2d0   :  { %4037 = vmatmul.mubr.msk.f32.vlgmr.msra.gmra.mrb[6].mxu0 %vm369_vm7, %v2982_v54 }
 0x2d1   :  { %4390 = vmatpush3.bf16.msra.mxu0 %v5386_v41  ;;  %4047 = vmatprep.mubr.msk.f32.mxu0 %vm4529_vm5, %v4528_v47 }
 0x2d2   :  { %4391 = vmatprep.subr.bf16.mxu0 %v4525_v3 }
 0x2d5   :  { %4394 = vmatpush3.bf16.msk.msra.mxu0 %vm4840_vm3, %v5394_v1 }
 0x2d8   :  { %4048 = vmatmul.mubr.msk.f32.vlgmr.msra.gmra.mrb[6].mxu0 %vm369_vm7, %v3057_v4 }
 0x32b   :  { %v1847_v36 = vpop.f32.mrb[4].mxu0 }
 0x32c   :  { %v1848_v46 = vadd.f32 %v1847_v36, %v367_v18  ;;  %v3848_v57 = vpop.f32.mrb[5].mxu0 }
 0x32e   :  { %v1851_v7 = vmax.f32 %v1848_v46, 0.0 }
 0x330   :  { %3872 = vmatmul.mubr.msk.f32.vlgmr.msra.gmra.mrb[2].mxu1 %vm1852_vm13, %v1851_v7 }
 0x331   :  { %4397 = vmatpush3.bf16.msra.mxu1 %v5006_v58  ;;  %4080 = vmatprep.mubr.msk.f32.mxu1 %vm4529_vm5, %v4528_v47 }
 0x332   :  { %4398 = vmatprep.subr.bf16.mxu1 %v4525_v3 }
 0x335   :  { %4400 = vmatpush3.bf16.msra.mxu1 %v5034_v8 }
 0x336   :  { %4401 = vmatprep.subr.bf16.mxu1 %v4525_v3 }
 0x339   :  { %4403 = vmatpush3.bf16.msra.mxu1 %v5068_v22 }
 0x33a   :  { %4404 = vmatprep.subr.bf16.mxu1 %v4525_v3 }
 0x33d   :  { %4406 = vmatpush3.bf16.msra.mxu1 %v5092_v38  ;;  %v368_v38 = vld [vmem:[%s5685_s8] sm:$0x1] }
 0x33e   :  { %4407 = vmatprep.subr.bf16.mxu1 %v4525_v3 }
 0x341   :  { %4409 = vmatpush3.bf16.msra.mxu1 %v5122_v53 }
 0x342   :  { %4410 = vmatprep.subr.bf16.mxu1 %v4525_v3 }
 0x345   :  { %4412 = vmatpush3.bf16.msra.mxu1 %v5142_v5 }
 0x346   :  { %4413 = vmatprep.subr.bf16.mxu1 %v4525_v3 }
 0x349   :  { %4415 = vmatpush3.bf16.msra.mxu1 %v5163_v16 }
 0x34a   :  { %4078 = vmatprep.subr.mxu1 %v4528_v47 }
 0x34d   :  { %4079 = vmatpush3.msra.mxu1 %v5411_v9 }
 0x34e   :  { %4416 = vmatprep.subr.bf16.mxu1 %v4525_v3 }
 0x3ab   :  { %v3126_v33 = vpop.f32.mrb[6].mxu0 }
 0x3ac   :  { %v4432_v58 = vadd.f32 %v3126_v33, %v5418_v45  ;;  %v4049_v8 = vpop.f32.mrb[7].mxu0 }
 0x3ae   :  { %v3131_v22 = vmax.f32 %v4432_v58, 0.0 }
 0x3b0   :  { %4081 = vmatmul.mubr.msk.f32.vlgmr.msra.gmra.mrb[4].mxu1 %vm1777_vm12, %v3131_v22 }
 0x3b1   :  { %4418 = vmatpush3.bf16.msra.mxu1 %v5434_v60  ;;  %4105 = vmatprep.mubr.msk.f32.mxu1 %vm4529_vm5, %v4528_v47 }
 0x3b2   :  { %4419 = vmatprep.subr.bf16.mxu1 %v4525_v3 }
 0x3b5   :  { %4421 = vmatpush3.bf16.msra.mxu1 %v5441_v63 }
 0x3b6   :  { %4422 = vmatprep.subr.bf16.mxu1 %v4525_v3 }
 0x3b9   :  { %4424 = vmatpush3.bf16.msra.mxu1 %v5455_v32 }
 0x3ba   :  { %4425 = vmatprep.subr.bf16.mxu1 %v4525_v3 }
 0x3bd   :  { %4427 = vmatpush3.bf16.msra.mxu1 %v5470_v30 }
 0x3be   :  { %4428 = vmatprep.subr.bf16.mxu1 %v4525_v3 }
 0x3c1   :  { %4430 = vmatpush3.bf16.msra.mxu1 %v5562_v56 }
 0x3c2   :  { %4103 = vmatprep.subr.mxu1 %v4528_v47 }
 0x3c5   :  { %4104 = vmatpush3.msk.msra.mxu1 %vm721_vm9, %v5573_v10 }
 0x403   :  { %v1925_v53 = vpop.f32.mrb[2].mxu1 }
 0x404   :  { %v1926_v5 = vadd.f32 %v1925_v53, %v368_v38  ;;  %v3873_v16 = vpop.f32.mrb[3].mxu1 }
 0x406   :  { %1930 = vst.msk [vmem:[#allocation2] sm:$0x1] %vm1929_vm14, %v1926_v5 }
 0x483   :  { %v3201_v28 = vpop.f32.mrb[4].mxu1 }
 0x484   :  { %v3202_v43 = vadd.f32 %v3201_v28, %v367_v18  ;;  %v4082_v42 = vpop.f32.mrb[5].mxu1 }
 0x486   :  { %v3205_v3 = vmax.f32 %v3202_v43, 0.0 }
 0x488   :  { %4106 = vmatmul.mubr.msk.f32.vlgmr.msra.gmra.mrb[6].mxu1 %vm1852_vm13, %v3205_v3 }
 0x55b   :  { %v3275_v47 = vpop.f32.mrb[6].mxu1 }
 0x55c   :  { %v3276_v6 = vadd.f32 %v3275_v47, %v368_v38  ;;  %v4107_v24 = vpop.f32.mrb[7].mxu1 }
 0x55e   :  { %3279 = vst.msk [vmem:[#allocation2 + $0x1] sm:$0x1] %vm1929_vm14, %v3276_v6 }
 0x55f   :  { %4512 = shalt.err (!%p4509_p4)
}
 0x560   :  { %s4513_s5 = scalar_lea.hbm %s5686_s9, 32 }
 0x561   :  { %p4514_p5 = scmp.ne.s32.totalorder %s5686_s9, %s4513_s5  ;;  %p4517_p6 = scmp.lt.u32.totalorder %s4513_s5, %s5686_s9 }
 0x563   :  { %p4519_p7 = pnand %p4517_p6, %p4514_p5 }
 0x565   :  { %4522 = shalt.err (!%p4519_p7)
}
 0x566   :  { %3289 = dma.vmem_to_hbm [thread:$0]  %s3287_s14, 32, %s5686_s9, [#allocation3]  }
 0x567   :  { %4523 = dma.done.wait [#allocation3], 32  }
 0x568   :  { %4524 = vsyncadd [#allocation3], 4294967264 }
 0x569   :  { %3293 = vsyncpa [#allocation3], 1 }

</bundles_post_ra>
